<compile_context>
chip_gen: v7x
topology: tpu7x:2x2x1
jax: 0.10.0
libtpu: 0.0.40
codegen_flags: <defaults>
</compile_context>

<pallas_src>
import functools

import jax
import jax.numpy as jnp
from jax import lax
from jax.experimental import pallas as pl
from jax.experimental.pallas import tpu as pltpu


def channel_attention_kernel(x_ref, wqkv_ref, bqkv_ref, wdw_ref, bdw_ref,
                             dwmask_ref, wproj_ref, bproj_ref, temp_ref,
                             attn_bias_ref, o_ref, *, w, hw_pad, n_img,
                             dw_bf16, mask_pad, approx_recip):
    c3 = wdw_ref.shape[0]
    c = c3 // 3
    W = x_ref.shape[1]                                    # = n_img * hw_pad

    x = x_ref[...]                                        # (c, W) bf16 (cast in wrapper)

    # ---- qkv 1x1 conv: (3c, c) @ (c, W) + bias  (MXU, bf16 in / f32 acc) ----
    qkv = jnp.dot(wqkv_ref[...], x, preferred_element_type=jnp.float32)
    qkv = qkv + bqkv_ref[...]                             # (3c, W) f32

    # ---- depthwise 3x3 conv (stride 1, pad 1) on the flat (3c, W) layout ----
    # Shift by (ky-1)*w + (kx-1) along the lane axis with pltpu.roll (XLU slot),
    # zero invalid / cross-image / wrapped taps with precomputed boundary masks.
    wdw = wdw_ref[...]                                    # (3c, 9)   f32 or bf16
    dwmask = dwmask_ref[...]                              # (9, W)    f32 or bf16
    qkv_t = qkv.astype(jnp.bfloat16) if dw_bf16 else qkv

    acc = wdw[:, 4:5] * qkv_t                             # center tap initializes acc
    for t in (0, 1, 2, 3, 5, 6, 7, 8):
        dy, dx = t // 3 - 1, t % 3 - 1
        s = dy * w + dx
        rolled = pltpu.roll(qkv_t, shift=(-s) % W, axis=1)   # rolled[p] = qkv[p + s]
        acc = acc + wdw[:, t:t + 1] * (rolled * dwmask[t:t + 1, :])
    acc = acc.astype(jnp.float32) + bdw_ref[...]          # (3c, W) f32
    if mask_pad:
        # zero q/k/v on the hw padding lanes (center-tap mask == per-image validity)
        acc = acc * dwmask[4:5, :].astype(jnp.float32)

    qa = acc[0:c]                                         # (c, W)   sublane-aligned slices
    ka = acc[c:2 * c]
    va = acc[2 * c:3 * c]

    temp = temp_ref[...]                                  # (c, 1)
    bias = attn_bias_ref[...]                             # (c, c)

    # ---- per-image fused block-diagonal channel attention ----
    outs = []
    for j in range(n_img):
        lo = j * hw_pad                                   # multiple of 128 -> aligned slice
        qj = qa[:, lo:lo + hw_pad]
        kj = ka[:, lo:lo + hw_pad]
        vj = va[:, lo:lo + hw_pad]

        # L2 normalize along spatial axis (F.normalize, eps=1e-12), rsqrt on EUP.
        def l2norm(t_):
            ss = jnp.sum(t_ * t_, axis=-1, keepdims=True)
            return t_ * lax.rsqrt(jnp.maximum(ss, 1e-24))

        qj = l2norm(qj)
        kj = l2norm(kj)

        logits = lax.dot_general(qj.astype(jnp.bfloat16), kj.astype(jnp.bfloat16),
                                 (((1,), (1,)), ((), ())),
                                 preferred_element_type=jnp.float32)   # (c, c)
        logits = logits * temp + bias                     # -1e30 cross-head / pad -> exact 0
        m = jnp.max(logits, axis=-1, keepdims=True)
        e = jnp.exp(logits - m)
        denom = jnp.sum(e, axis=-1, keepdims=True)
        if approx_recip:
            attn = e * pl.reciprocal(denom, approx=True)  # EUP slot
        else:
            attn = e / denom
        oj = jnp.dot(attn.astype(jnp.bfloat16), vj.astype(jnp.bfloat16),
                     preferred_element_type=jnp.float32)  # (c, hw_pad)
        outs.append(oj.astype(jnp.bfloat16))

    out_cat = outs[0] if n_img == 1 else jnp.concatenate(outs, axis=1)  # (c, W) bf16

    # ---- project_out 1x1 conv over the full lane width ----
    out = jnp.dot(wproj_ref[...], out_cat, preferred_element_type=jnp.float32)
    out = out + bproj_ref[...]
    o_ref[...] = out.astype(o_ref.dtype)


def channel_attention(x, params, num_heads, *, approx_recip=True, interpret=False):
    wqkv, bqkv, wdw, bdw, wproj, bproj, temp = params
    b, c, h, w = x.shape
    hw = h * w
    f32, bf16 = jnp.float32, jnp.bfloat16

    # ---- hardware detection (best effort) ----
    try:
        kind = jax.devices()[0].device_kind.lower()
    except Exception:
        kind = ""
    is_v7 = "v7" in kind
    is_v6 = "v6" in kind
    is_v5e = ("v5 lite" in kind) or ("v5e" in kind) or ("v5lite" in kind)
    dw_bf16 = bool(is_v6 or is_v7)            # bf16 VALU path exists on v6e/v7x only
    if is_v7:
        vmem_cap = 48 << 20                   # 64 MiB physical -> leave headroom
    elif is_v6 or is_v5e:
        vmem_cap = 100 << 20                  # 128 MiB physical
    else:
        vmem_cap = 64 << 20

    # ---- padding: lanes (hw -> mult of 128), channels (c -> mult of 8, per chunk) ----
    hw_pad = ((hw + 127) // 128) * 128
    c_p = ((c + 7) // 8) * 8
    c3_p = 3 * c_p

    def pad_axis(a, axis, n_to):
        padw = [(0, 0)] * a.ndim
        padw[axis] = (0, n_to - a.shape[axis])
        return jnp.pad(a, padw)

    wqkv_p = pad_axis(pad_axis(wqkv.reshape(3, c, c), 1, c_p), 2, c_p).reshape(c3_p, c_p)
    bqkv_p = pad_axis(bqkv.reshape(3, c), 1, c_p).reshape(c3_p, 1)
    wdw_p = pad_axis(wdw.reshape(3, c, 9), 1, c_p).reshape(c3_p, 9)
    bdw_p = pad_axis(bdw.reshape(3, c), 1, c_p).reshape(c3_p, 1)
    wproj_p = pad_axis(pad_axis(wproj.reshape(c, c), 0, c_p), 1, c_p)
    bproj_p = pad_axis(bproj.reshape(c), 0, c_p).reshape(c_p, 1)

    # Per-row temperature and block-diagonal attention bias; padded channels get a
    # dummy head id so they never contribute to real rows' softmax.
    c_head = c // num_heads
    head_id = jnp.concatenate([
        jnp.repeat(jnp.arange(num_heads, dtype=jnp.int32), c_head),
        jnp.full((c_p - c,), num_heads, jnp.int32)])
    same_head = head_id[:, None] == head_id[None, :]
    attn_bias = jnp.where(same_head, 0.0, -1e30).astype(f32)          # (c_p, c_p)
    temp_row = jnp.concatenate([
        jnp.repeat(temp.reshape(num_heads).astype(f32), c_head),
        jnp.ones((c_p - c,), f32)]).reshape(c_p, 1)

    # Per-image depthwise boundary masks (zeros over the hw padding lanes).
    yy = jnp.repeat(jnp.arange(h, dtype=jnp.int32), w)
    xx = jnp.tile(jnp.arange(w, dtype=jnp.int32), h)
    masks = []
    for dy in (-1, 0, 1):
        for dx in (-1, 0, 1):
            masks.append((yy + dy >= 0) & (yy + dy < h) & (xx + dx >= 0) & (xx + dx < w))
    dwmask_img = jnp.stack(masks, axis=0).astype(f32)                 # (9, hw)
    if hw_pad != hw:
        dwmask_img = jnp.pad(dwmask_img, ((0, 0), (0, hw_pad - hw)))

    # ---- choose how many images to stack into the lane axis per grid step ----
    def est_bytes(nb):
        Wl = nb * hw_pad
        # ~8 live f32 (3c, W) intermediates + bf16 x / f32 out double buffers + slack
        return 4 * Wl * (8 * c3_p + 4 * c_p) + 2 * Wl * c_p * (2 + 4) + (4 << 20)

    B_blk = 1
    for d in range(1, b + 1):
        if b % d == 0 and est_bytes(d) <= vmem_cap:
            B_blk = d
    if is_v7 and b >= 2 and b // B_blk < 2:
        # keep >= 2 grid steps so both v7x TensorCores get work
        for d in range(b // 2, 0, -1):
            if b % d == 0 and est_bytes(d) <= vmem_cap:
                B_blk = d
                break
    G = b // B_blk
    W = B_blk * hw_pad

    # ---- lane-dense, batch-stacked input (wrapper-side layout plumbing only) ----
    x_flat = x.reshape(b, c, hw).astype(bf16)
    if c_p != c:
        x_flat = pad_axis(x_flat, 1, c_p)
    if hw_pad != hw:
        x_flat = jnp.pad(x_flat, ((0, 0), (0, 0), (0, hw_pad - hw)))
    x_st = (x_flat.reshape(G, B_blk, c_p, hw_pad)
                  .transpose(0, 2, 1, 3)
                  .reshape(G, c_p, W))

    mask_dtype = bf16 if dw_bf16 else f32
    dwmask_st = jnp.tile(dwmask_img.astype(mask_dtype), (1, B_blk))   # (9, W)

    vmem_limit = int(min(vmem_cap, max(32 << 20, est_bytes(B_blk))))

    kernel = functools.partial(
        channel_attention_kernel, w=w, hw_pad=hw_pad, n_img=B_blk,
        dw_bf16=dw_bf16, mask_pad=(hw_pad != hw), approx_recip=approx_recip)

    out_st = pl.pallas_call(
        kernel,
        out_shape=jax.ShapeDtypeStruct((G, c_p, W), x.dtype),
        grid_spec=pltpu.PrefetchScalarGridSpec(
            num_scalar_prefetch=0,
            grid=(G,),
            in_specs=[
                pl.BlockSpec((None, c_p, W), lambda i: (i, 0, 0)),   # x (B_blk images, lane-stacked)
                pl.BlockSpec((c3_p, c_p), lambda i: (0, 0)),         # qkv 1x1 weight (bf16)
                pl.BlockSpec((c3_p, 1), lambda i: (0, 0)),           # qkv bias (f32)
                pl.BlockSpec((c3_p, 9), lambda i: (0, 0)),           # depthwise 3x3 weight
                pl.BlockSpec((c3_p, 1), lambda i: (0, 0)),           # depthwise bias (f32)
                pl.BlockSpec((9, W), lambda i: (0, 0)),              # depthwise boundary masks
                pl.BlockSpec((c_p, c_p), lambda i: (0, 0)),          # project_out weight (bf16)
                pl.BlockSpec((c_p, 1), lambda i: (0, 0)),            # project_out bias (f32)
                pl.BlockSpec((c_p, 1), lambda i: (0, 0)),            # per-row temperature
                pl.BlockSpec((c_p, c_p), lambda i: (0, 0)),          # block-diagonal attn bias
            ],
            out_specs=pl.BlockSpec((None, c_p, W), lambda i: (i, 0, 0)),
        ),
        compiler_params=pltpu.CompilerParams(
            dimension_semantics=("parallel",),
            vmem_limit_bytes=vmem_limit,
        ),
        interpret=interpret,
    )(x_st,
      wqkv_p.astype(bf16),
      bqkv_p.astype(f32),
      wdw_p.astype(mask_dtype),
      bdw_p.astype(f32),
      dwmask_st,
      wproj_p.astype(bf16),
      bproj_p.astype(f32),
      temp_row,
      attn_bias)

    out = (out_st.reshape(G, c_p, B_blk, hw_pad)
                 .transpose(0, 2, 1, 3)
                 .reshape(b, c_p, hw_pad)[:, :c, :hw]
                 .reshape(b, c, h, w))
    return out


def channel_attention_ref(x, params, num_heads):
    """Pure-JAX reference mirroring the PyTorch module semantics (f32)."""
    wqkv, bqkv, wdw, bdw, wproj, bproj, temp = params
    b, c, h, w = x.shape
    dn = ('NCHW', 'OIHW', 'NCHW')
    qkv = lax.conv_general_dilated(x, wqkv.reshape(3 * c, c, 1, 1), (1, 1), 'VALID',
                                   dimension_numbers=dn) + bqkv[None, :, None, None]
    qkv = lax.conv_general_dilated(qkv, wdw.reshape(3 * c, 1, 3, 3), (1, 1),
                                   ((1, 1), (1, 1)), dimension_numbers=dn,
                                   feature_group_count=3 * c) + bdw[None, :, None, None]
    q, k, v = jnp.split(qkv, 3, axis=1)

    def rearr(t):
        return t.reshape(b, num_heads, c // num_heads, h * w)

    q, k, v = rearr(q), rearr(k), rearr(v)

    def l2n(t):
        n = jnp.sqrt(jnp.sum(t * t, axis=-1, keepdims=True))
        return t / jnp.maximum(n, 1e-12)

    q, k = l2n(q), l2n(k)
    attn = jnp.einsum('bhck,bhdk->bhcd', q, k) * temp[None]
    attn = jax.nn.softmax(attn, axis=-1)
    out = jnp.einsum('bhcd,bhdk->bhck', attn, v)
    out = out.reshape(b, c, h, w)
    out = lax.conv_general_dilated(out, wproj.reshape(c, c, 1, 1), (1, 1), 'VALID',
                                   dimension_numbers=dn) + bproj[None, :, None, None]
    return out


if __name__ == "__main__":
    b, dim, num_heads, h, w = 2, 8, 2, 16, 16
    f32 = jnp.float32
    key = jax.random.PRNGKey(0)
    ks = jax.random.split(key, 8)

    # Deterministic synthetic parameters (shapes match the PyTorch module with bias=True).
    wqkv = 0.2 * jax.random.normal(ks[0], (3 * dim, dim), f32)          # qkv 1x1 conv weight
    bqkv = 0.1 * jax.random.normal(ks[1], (3 * dim,), f32)
    wdw = 0.2 * jax.random.normal(ks[2], (3 * dim, 3, 3), f32)          # depthwise 3x3 weight
    bdw = 0.1 * jax.random.normal(ks[3], (3 * dim,), f32)
    wproj = 0.2 * jax.random.normal(ks[4], (dim, dim), f32)             # project_out 1x1 weight
    bproj = 0.1 * jax.random.normal(ks[5], (dim,), f32)
    temp = jnp.ones((num_heads, 1, 1), f32) + 0.1 * jax.random.normal(ks[6], (num_heads, 1, 1), f32)
    params = (wqkv, bqkv, wdw, bdw, wproj, bproj, temp)

    x = jax.random.normal(ks[7], (b, dim, h, w), f32)

    out = channel_attention(x, params, num_heads)
    out = jax.block_until_ready(out)

    ref = channel_attention_ref(x, params, num_heads)
    assert out.shape == ref.shape, (out.shape, ref.shape)
    # bf16 MXU inputs / bf16 depthwise (on v6e+) with f32 accumulation -> loosened tolerance.
    err = float(jnp.max(jnp.abs(out - ref)))
    assert err < 5e-2, f"max abs err {err}"
    print("KERNEL_OK")
</pallas_src>

<mosaic_0001>
module attributes {stable_mosaic.version = 11 : i64} {
  func.func @channel_attention_kernel(%arg0: i32, %arg1: memref<1x8x512xbf16, #tpu.memory_space<vmem>>, %arg2: memref<24x8xbf16, #tpu.memory_space<vmem>>, %arg3: memref<24x1xf32, #tpu.memory_space<vmem>>, %arg4: memref<24x9xf32, #tpu.memory_space<vmem>>, %arg5: memref<24x1xf32, #tpu.memory_space<vmem>>, %arg6: memref<9x512xf32, #tpu.memory_space<vmem>>, %arg7: memref<8x8xbf16, #tpu.memory_space<vmem>>, %arg8: memref<8x1xf32, #tpu.memory_space<vmem>>, %arg9: memref<8x1xf32, #tpu.memory_space<vmem>>, %arg10: memref<8x8xf32, #tpu.memory_space<vmem>>, %arg11: memref<1x8x512xf32, #tpu.memory_space<vmem>>) attributes {dimension_semantics = [#tpu.dimension_semantics<parallel>], iteration_bounds = array<i64: 1>, scalar_prefetch = 0 : i64, scratch_operands = 0 : i64, tpu.core_type = #tpu.core_type<tc>, window_params = [{transform_indices = @transform_0, window_bounds = array<i64: 1, 8, 512>}, {pipeline_mode = #tpu.pipeline_mode<synchronous>, transform_indices = @transform_1, window_bounds = array<i64: 24, 8>}, {pipeline_mode = #tpu.pipeline_mode<synchronous>, transform_indices = @transform_2, window_bounds = array<i64: 24, 1>}, {pipeline_mode = #tpu.pipeline_mode<synchronous>, transform_indices = @transform_3, window_bounds = array<i64: 24, 9>}, {pipeline_mode = #tpu.pipeline_mode<synchronous>, transform_indices = @transform_4, window_bounds = array<i64: 24, 1>}, {pipeline_mode = #tpu.pipeline_mode<synchronous>, transform_indices = @transform_5, window_bounds = array<i64: 9, 512>}, {pipeline_mode = #tpu.pipeline_mode<synchronous>, transform_indices = @transform_6, window_bounds = array<i64: 8, 8>}, {pipeline_mode = #tpu.pipeline_mode<synchronous>, transform_indices = @transform_7, window_bounds = array<i64: 8, 1>}, {pipeline_mode = #tpu.pipeline_mode<synchronous>, transform_indices = @transform_8, window_bounds = array<i64: 8, 1>}, {pipeline_mode = #tpu.pipeline_mode<synchronous>, transform_indices = @transform_9, window_bounds = array<i64: 8, 8>}, {transform_indices = @transform_10, window_bounds = array<i64: 1, 8, 512>}]} {
    %c0 = arith.constant 0 : index
    %c0_0 = arith.constant 0 : index
    %c0_1 = arith.constant 0 : index
    %0 = vector.load %arg1[%c0, %c0_0, %c0_1] : memref<1x8x512xbf16, #tpu.memory_space<vmem>>, vector<1x8x512xbf16>
    %1 = vector.shape_cast %0 : vector<1x8x512xbf16> to vector<8x512xbf16>
    %c0_2 = arith.constant 0 : index
    %c0_3 = arith.constant 0 : index
    %2 = vector.load %arg2[%c0_2, %c0_3] : memref<24x8xbf16, #tpu.memory_space<vmem>>, vector<24x8xbf16>
    %cst = arith.constant dense<0.000000e+00> : vector<24x512xf32>
    %3 = tpu.matmul %2, %1, %cst {dimension_numbers = #tpu.dot_dimension_numbers<[1], [0], [0], [1], [0, 0, 1, 1], [], []>} : vector<24x8xbf16>, vector<8x512xbf16>, vector<24x512xf32> -> vector<24x512xf32>
    %c0_4 = arith.constant 0 : index
    %c0_5 = arith.constant 0 : index
    %4 = vector.load %arg3[%c0_4, %c0_5] : memref<24x1xf32, #tpu.memory_space<vmem>>, vector<24x1xf32>
    %5 = vector.broadcast %4 : vector<24x1xf32> to vector<24x512xf32>
    %6 = arith.addf %3, %5 : vector<24x512xf32>
    %c0_6 = arith.constant 0 : index
    %c0_7 = arith.constant 0 : index
    %7 = vector.load %arg4[%c0_6, %c0_7] : memref<24x9xf32, #tpu.memory_space<vmem>>, vector<24x9xf32>
    %c0_8 = arith.constant 0 : index
    %c0_9 = arith.constant 0 : index
    %8 = vector.load %arg6[%c0_8, %c0_9] : memref<9x512xf32, #tpu.memory_space<vmem>>, vector<9x512xf32>
    %9 = vector.extract_strided_slice %7 {offsets = [0, 4], sizes = [24, 1], strides = [1, 1]} : vector<24x9xf32> to vector<24x1xf32>
    %10 = vector.broadcast %9 : vector<24x1xf32> to vector<24x512xf32>
    %11 = arith.mulf %10, %6 : vector<24x512xf32>
    %c17_i32 = arith.constant 17 : i32
    %12 = tpu.dynamic_rotate %6 by %c17_i32 dim 1 : vector<24x512xf32>, i32 -> vector<24x512xf32>
    %13 = vector.extract_strided_slice %7 {offsets = [0, 0], sizes = [24, 1], strides = [1, 1]} : vector<24x9xf32> to vector<24x1xf32>
    %14 = vector.extract_strided_slice %8 {offsets = [0, 0], sizes = [1, 512], strides = [1, 1]} : vector<9x512xf32> to vector<1x512xf32>
    %15 = vector.broadcast %14 : vector<1x512xf32> to vector<24x512xf32>
    %16 = arith.mulf %12, %15 : vector<24x512xf32>
    %17 = vector.broadcast %13 : vector<24x1xf32> to vector<24x512xf32>
    %18 = arith.mulf %17, %16 : vector<24x512xf32>
    %19 = arith.addf %11, %18 : vector<24x512xf32>
    %c16_i32 = arith.constant 16 : i32
    %20 = tpu.dynamic_rotate %6 by %c16_i32 dim 1 : vector<24x512xf32>, i32 -> vector<24x512xf32>
    %21 = vector.extract_strided_slice %7 {offsets = [0, 1], sizes = [24, 1], strides = [1, 1]} : vector<24x9xf32> to vector<24x1xf32>
    %22 = vector.extract_strided_slice %8 {offsets = [1, 0], sizes = [1, 512], strides = [1, 1]} : vector<9x512xf32> to vector<1x512xf32>
    %23 = vector.broadcast %22 : vector<1x512xf32> to vector<24x512xf32>
    %24 = arith.mulf %20, %23 : vector<24x512xf32>
    %25 = vector.broadcast %21 : vector<24x1xf32> to vector<24x512xf32>
    %26 = arith.mulf %25, %24 : vector<24x512xf32>
    %27 = arith.addf %19, %26 : vector<24x512xf32>
    %c15_i32 = arith.constant 15 : i32
    %28 = tpu.dynamic_rotate %6 by %c15_i32 dim 1 : vector<24x512xf32>, i32 -> vector<24x512xf32>
    %29 = vector.extract_strided_slice %7 {offsets = [0, 2], sizes = [24, 1], strides = [1, 1]} : vector<24x9xf32> to vector<24x1xf32>
    %30 = vector.extract_strided_slice %8 {offsets = [2, 0], sizes = [1, 512], strides = [1, 1]} : vector<9x512xf32> to vector<1x512xf32>
    %31 = vector.broadcast %30 : vector<1x512xf32> to vector<24x512xf32>
    %32 = arith.mulf %28, %31 : vector<24x512xf32>
    %33 = vector.broadcast %29 : vector<24x1xf32> to vector<24x512xf32>
    %34 = arith.mulf %33, %32 : vector<24x512xf32>
    %35 = arith.addf %27, %34 : vector<24x512xf32>
    %c1_i32 = arith.constant 1 : i32
    %36 = tpu.dynamic_rotate %6 by %c1_i32 dim 1 : vector<24x512xf32>, i32 -> vector<24x512xf32>
    %37 = vector.extract_strided_slice %7 {offsets = [0, 3], sizes = [24, 1], strides = [1, 1]} : vector<24x9xf32> to vector<24x1xf32>
    %38 = vector.extract_strided_slice %8 {offsets = [3, 0], sizes = [1, 512], strides = [1, 1]} : vector<9x512xf32> to vector<1x512xf32>
    %39 = vector.broadcast %38 : vector<1x512xf32> to vector<24x512xf32>
    %40 = arith.mulf %36, %39 : vector<24x512xf32>
    %41 = vector.broadcast %37 : vector<24x1xf32> to vector<24x512xf32>
    %42 = arith.mulf %41, %40 : vector<24x512xf32>
    %43 = arith.addf %35, %42 : vector<24x512xf32>
    %c511_i32 = arith.constant 511 : i32
    %44 = tpu.dynamic_rotate %6 by %c511_i32 dim 1 : vector<24x512xf32>, i32 -> vector<24x512xf32>
    %45 = vector.extract_strided_slice %7 {offsets = [0, 5], sizes = [24, 1], strides = [1, 1]} : vector<24x9xf32> to vector<24x1xf32>
    %46 = vector.extract_strided_slice %8 {offsets = [5, 0], sizes = [1, 512], strides = [1, 1]} : vector<9x512xf32> to vector<1x512xf32>
    %47 = vector.broadcast %46 : vector<1x512xf32> to vector<24x512xf32>
    %48 = arith.mulf %44, %47 : vector<24x512xf32>
    %49 = vector.broadcast %45 : vector<24x1xf32> to vector<24x512xf32>
    %50 = arith.mulf %49, %48 : vector<24x512xf32>
    %51 = arith.addf %43, %50 : vector<24x512xf32>
    %c497_i32 = arith.constant 497 : i32
    %52 = tpu.dynamic_rotate %6 by %c497_i32 dim 1 : vector<24x512xf32>, i32 -> vector<24x512xf32>
    %53 = vector.extract_strided_slice %7 {offsets = [0, 6], sizes = [24, 1], strides = [1, 1]} : vector<24x9xf32> to vector<24x1xf32>
    %54 = vector.extract_strided_slice %8 {offsets = [6, 0], sizes = [1, 512], strides = [1, 1]} : vector<9x512xf32> to vector<1x512xf32>
    %55 = vector.broadcast %54 : vector<1x512xf32> to vector<24x512xf32>
    %56 = arith.mulf %52, %55 : vector<24x512xf32>
    %57 = vector.broadcast %53 : vector<24x1xf32> to vector<24x512xf32>
    %58 = arith.mulf %57, %56 : vector<24x512xf32>
    %59 = arith.addf %51, %58 : vector<24x512xf32>
    %c496_i32 = arith.constant 496 : i32
    %60 = tpu.dynamic_rotate %6 by %c496_i32 dim 1 : vector<24x512xf32>, i32 -> vector<24x512xf32>
    %61 = vector.extract_strided_slice %7 {offsets = [0, 7], sizes = [24, 1], strides = [1, 1]} : vector<24x9xf32> to vector<24x1xf32>
    %62 = vector.extract_strided_slice %8 {offsets = [7, 0], sizes = [1, 512], strides = [1, 1]} : vector<9x512xf32> to vector<1x512xf32>
    %63 = vector.broadcast %62 : vector<1x512xf32> to vector<24x512xf32>
    %64 = arith.mulf %60, %63 : vector<24x512xf32>
    %65 = vector.broadcast %61 : vector<24x1xf32> to vector<24x512xf32>
    %66 = arith.mulf %65, %64 : vector<24x512xf32>
    %67 = arith.addf %59, %66 : vector<24x512xf32>
    %c495_i32 = arith.constant 495 : i32
    %68 = tpu.dynamic_rotate %6 by %c495_i32 dim 1 : vector<24x512xf32>, i32 -> vector<24x512xf32>
    %69 = vector.extract_strided_slice %7 {offsets = [0, 8], sizes = [24, 1], strides = [1, 1]} : vector<24x9xf32> to vector<24x1xf32>
    %70 = vector.extract_strided_slice %8 {offsets = [8, 0], sizes = [1, 512], strides = [1, 1]} : vector<9x512xf32> to vector<1x512xf32>
    %71 = vector.broadcast %70 : vector<1x512xf32> to vector<24x512xf32>
    %72 = arith.mulf %68, %71 : vector<24x512xf32>
    %73 = vector.broadcast %69 : vector<24x1xf32> to vector<24x512xf32>
    %74 = arith.mulf %73, %72 : vector<24x512xf32>
    %75 = arith.addf %67, %74 : vector<24x512xf32>
    %c0_10 = arith.constant 0 : index
    %c0_11 = arith.constant 0 : index
    %76 = vector.load %arg5[%c0_10, %c0_11] : memref<24x1xf32, #tpu.memory_space<vmem>>, vector<24x1xf32>
    %77 = vector.broadcast %76 : vector<24x1xf32> to vector<24x512xf32>
    %78 = arith.addf %75, %77 : vector<24x512xf32>
    %79 = vector.extract_strided_slice %78 {offsets = [0, 0], sizes = [8, 512], strides = [1, 1]} : vector<24x512xf32> to vector<8x512xf32>
    %80 = vector.extract_strided_slice %78 {offsets = [8, 0], sizes = [8, 512], strides = [1, 1]} : vector<24x512xf32> to vector<8x512xf32>
    %81 = vector.extract_strided_slice %78 {offsets = [16, 0], sizes = [8, 512], strides = [1, 1]} : vector<24x512xf32> to vector<8x512xf32>
    %c0_12 = arith.constant 0 : index
    %c0_13 = arith.constant 0 : index
    %82 = vector.load %arg9[%c0_12, %c0_13] : memref<8x1xf32, #tpu.memory_space<vmem>>, vector<8x1xf32>
    %c0_14 = arith.constant 0 : index
    %c0_15 = arith.constant 0 : index
    %83 = vector.load %arg10[%c0_14, %c0_15] : memref<8x8xf32, #tpu.memory_space<vmem>>, vector<8x8xf32>
    %84 = vector.extract_strided_slice %79 {offsets = [0, 0], sizes = [8, 256], strides = [1, 1]} : vector<8x512xf32> to vector<8x256xf32>
    %85 = vector.extract_strided_slice %80 {offsets = [0, 0], sizes = [8, 256], strides = [1, 1]} : vector<8x512xf32> to vector<8x256xf32>
    %86 = vector.extract_strided_slice %81 {offsets = [0, 0], sizes = [8, 256], strides = [1, 1]} : vector<8x512xf32> to vector<8x256xf32>
    %87 = arith.mulf %84, %84 : vector<8x256xf32>
    %cst_16 = arith.constant dense<0.000000e+00> : vector<8xf32>
    %88 = vector.multi_reduction <add>, %87, %cst_16 [1] : vector<8x256xf32> to vector<8xf32>
    %89 = vector.shape_cast %88 : vector<8xf32> to vector<8x1xf32>
    %cst_17 = arith.constant 1.000000e-24 : f32
    %90 = vector.broadcast %cst_17 : f32 to vector<8x1xf32>
    %91 = arith.maximumf %89, %90 : vector<8x1xf32>
    %92 = math.rsqrt %91 : vector<8x1xf32>
    %93 = vector.broadcast %92 : vector<8x1xf32> to vector<8x256xf32>
    %94 = arith.mulf %84, %93 : vector<8x256xf32>
    %95 = arith.mulf %85, %85 : vector<8x256xf32>
    %cst_18 = arith.constant dense<0.000000e+00> : vector<8xf32>
    %96 = vector.multi_reduction <add>, %95, %cst_18 [1] : vector<8x256xf32> to vector<8xf32>
    %97 = vector.shape_cast %96 : vector<8xf32> to vector<8x1xf32>
    %cst_19 = arith.constant 1.000000e-24 : f32
    %98 = vector.broadcast %cst_19 : f32 to vector<8x1xf32>
    %99 = arith.maximumf %97, %98 : vector<8x1xf32>
    %100 = math.rsqrt %99 : vector<8x1xf32>
    %101 = vector.broadcast %100 : vector<8x1xf32> to vector<8x256xf32>
    %102 = arith.mulf %85, %101 : vector<8x256xf32>
    %103 = arith.truncf %94 : vector<8x256xf32> to vector<8x256xbf16>
    %104 = arith.truncf %102 : vector<8x256xf32> to vector<8x256xbf16>
    %cst_20 = arith.constant dense<0.000000e+00> : vector<8x8xf32>
    %105 = tpu.matmul %103, %104, %cst_20 {dimension_numbers = #tpu.dot_dimension_numbers<[1], [1], [0], [0], [0, 0, 1, 0], [], []>} : vector<8x256xbf16>, vector<8x256xbf16>, vector<8x8xf32> -> vector<8x8xf32>
    %106 = vector.broadcast %82 : vector<8x1xf32> to vector<8x8xf32>
    %107 = arith.mulf %105, %106 : vector<8x8xf32>
    %108 = arith.addf %107, %83 : vector<8x8xf32>
    %cst_21 = arith.constant dense<0xFF800000> : vector<8xf32>
    %109 = vector.multi_reduction <maximumf>, %108, %cst_21 [1] : vector<8x8xf32> to vector<8xf32>
    %110 = vector.shape_cast %109 : vector<8xf32> to vector<8x1xf32>
    %111 = vector.broadcast %110 : vector<8x1xf32> to vector<8x8xf32>
    %112 = arith.subf %108, %111 : vector<8x8xf32>
    %113 = math.exp %112 : vector<8x8xf32>
    %cst_22 = arith.constant dense<0.000000e+00> : vector<8xf32>
    %114 = vector.multi_reduction <add>, %113, %cst_22 [1] : vector<8x8xf32> to vector<8xf32>
    %115 = vector.shape_cast %114 : vector<8xf32> to vector<8x1xf32>
    %116 = tpu.reciprocal %115 {approx = true} : vector<8x1xf32> -> vector<8x1xf32>
    %117 = vector.broadcast %116 : vector<8x1xf32> to vector<8x8xf32>
    %118 = arith.mulf %113, %117 : vector<8x8xf32>
    %119 = arith.truncf %118 : vector<8x8xf32> to vector<8x8xbf16>
    %120 = arith.truncf %86 : vector<8x256xf32> to vector<8x256xbf16>
    %cst_23 = arith.constant dense<0.000000e+00> : vector<8x256xf32>
    %121 = tpu.matmul %119, %120, %cst_23 {dimension_numbers = #tpu.dot_dimension_numbers<[1], [0], [0], [1], [0, 0, 1, 1], [], []>} : vector<8x8xbf16>, vector<8x256xbf16>, vector<8x256xf32> -> vector<8x256xf32>
    %122 = arith.truncf %121 : vector<8x256xf32> to vector<8x256xbf16>
    %123 = vector.extract_strided_slice %79 {offsets = [0, 256], sizes = [8, 256], strides = [1, 1]} : vector<8x512xf32> to vector<8x256xf32>
    %124 = vector.extract_strided_slice %80 {offsets = [0, 256], sizes = [8, 256], strides = [1, 1]} : vector<8x512xf32> to vector<8x256xf32>
    %125 = vector.extract_strided_slice %81 {offsets = [0, 256], sizes = [8, 256], strides = [1, 1]} : vector<8x512xf32> to vector<8x256xf32>
    %126 = arith.mulf %123, %123 : vector<8x256xf32>
    %cst_24 = arith.constant dense<0.000000e+00> : vector<8xf32>
    %127 = vector.multi_reduction <add>, %126, %cst_24 [1] : vector<8x256xf32> to vector<8xf32>
    %128 = vector.shape_cast %127 : vector<8xf32> to vector<8x1xf32>
    %cst_25 = arith.constant 1.000000e-24 : f32
    %129 = vector.broadcast %cst_25 : f32 to vector<8x1xf32>
    %130 = arith.maximumf %128, %129 : vector<8x1xf32>
    %131 = math.rsqrt %130 : vector<8x1xf32>
    %132 = vector.broadcast %131 : vector<8x1xf32> to vector<8x256xf32>
    %133 = arith.mulf %123, %132 : vector<8x256xf32>
    %134 = arith.mulf %124, %124 : vector<8x256xf32>
    %cst_26 = arith.constant dense<0.000000e+00> : vector<8xf32>
    %135 = vector.multi_reduction <add>, %134, %cst_26 [1] : vector<8x256xf32> to vector<8xf32>
    %136 = vector.shape_cast %135 : vector<8xf32> to vector<8x1xf32>
    %cst_27 = arith.constant 1.000000e-24 : f32
    %137 = vector.broadcast %cst_27 : f32 to vector<8x1xf32>
    %138 = arith.maximumf %136, %137 : vector<8x1xf32>
    %139 = math.rsqrt %138 : vector<8x1xf32>
    %140 = vector.broadcast %139 : vector<8x1xf32> to vector<8x256xf32>
    %141 = arith.mulf %124, %140 : vector<8x256xf32>
    %142 = arith.truncf %133 : vector<8x256xf32> to vector<8x256xbf16>
    %143 = arith.truncf %141 : vector<8x256xf32> to vector<8x256xbf16>
    %cst_28 = arith.constant dense<0.000000e+00> : vector<8x8xf32>
    %144 = tpu.matmul %142, %143, %cst_28 {dimension_numbers = #tpu.dot_dimension_numbers<[1], [1], [0], [0], [0, 0, 1, 0], [], []>} : vector<8x256xbf16>, vector<8x256xbf16>, vector<8x8xf32> -> vector<8x8xf32>
    %145 = vector.broadcast %82 : vector<8x1xf32> to vector<8x8xf32>
    %146 = arith.mulf %144, %145 : vector<8x8xf32>
    %147 = arith.addf %146, %83 : vector<8x8xf32>
    %cst_29 = arith.constant dense<0xFF800000> : vector<8xf32>
    %148 = vector.multi_reduction <maximumf>, %147, %cst_29 [1] : vector<8x8xf32> to vector<8xf32>
    %149 = vector.shape_cast %148 : vector<8xf32> to vector<8x1xf32>
    %150 = vector.broadcast %149 : vector<8x1xf32> to vector<8x8xf32>
    %151 = arith.subf %147, %150 : vector<8x8xf32>
    %152 = math.exp %151 : vector<8x8xf32>
    %cst_30 = arith.constant dense<0.000000e+00> : vector<8xf32>
    %153 = vector.multi_reduction <add>, %152, %cst_30 [1] : vector<8x8xf32> to vector<8xf32>
    %154 = vector.shape_cast %153 : vector<8xf32> to vector<8x1xf32>
    %155 = tpu.reciprocal %154 {approx = true} : vector<8x1xf32> -> vector<8x1xf32>
    %156 = vector.broadcast %155 : vector<8x1xf32> to vector<8x8xf32>
    %157 = arith.mulf %152, %156 : vector<8x8xf32>
    %158 = arith.truncf %157 : vector<8x8xf32> to vector<8x8xbf16>
    %159 = arith.truncf %125 : vector<8x256xf32> to vector<8x256xbf16>
    %cst_31 = arith.constant dense<0.000000e+00> : vector<8x256xf32>
    %160 = tpu.matmul %158, %159, %cst_31 {dimension_numbers = #tpu.dot_dimension_numbers<[1], [0], [0], [1], [0, 0, 1, 1], [], []>} : vector<8x8xbf16>, vector<8x256xbf16>, vector<8x256xf32> -> vector<8x256xf32>
    %161 = arith.truncf %160 : vector<8x256xf32> to vector<8x256xbf16>
    %162 = tpu.concatenate %122, %161 in 1 : vector<8x256xbf16>, vector<8x256xbf16> -> vector<8x512xbf16>
    %c0_32 = arith.constant 0 : index
    %c0_33 = arith.constant 0 : index
    %163 = vector.load %arg7[%c0_32, %c0_33] : memref<8x8xbf16, #tpu.memory_space<vmem>>, vector<8x8xbf16>
    %cst_34 = arith.constant dense<0.000000e+00> : vector<8x512xf32>
    %164 = tpu.matmul %163, %162, %cst_34 {dimension_numbers = #tpu.dot_dimension_numbers<[1], [0], [0], [1], [0, 0, 1, 1], [], []>} : vector<8x8xbf16>, vector<8x512xbf16>, vector<8x512xf32> -> vector<8x512xf32>
    %c0_35 = arith.constant 0 : index
    %c0_36 = arith.constant 0 : index
    %165 = vector.load %arg8[%c0_35, %c0_36] : memref<8x1xf32, #tpu.memory_space<vmem>>, vector<8x1xf32>
    %166 = vector.broadcast %165 : vector<8x1xf32> to vector<8x512xf32>
    %167 = arith.addf %164, %166 : vector<8x512xf32>
    %c0_37 = arith.constant 0 : index
    %c0_38 = arith.constant 0 : index
    %c0_39 = arith.constant 0 : index
    %168 = vector.load %arg11[%c0_37, %c0_38, %c0_39] : memref<1x8x512xf32, #tpu.memory_space<vmem>>, vector<1x8x512xf32>
    %169 = vector.shape_cast %168 : vector<1x8x512xf32> to vector<8x512xf32>
    %170 = vector.shape_cast %167 : vector<8x512xf32> to vector<1x8x512xf32>
    tpu.vector_store %arg11[%c0_37, %c0_38, %c0_39], %170 {strides = array<i32>} : memref<1x8x512xf32, #tpu.memory_space<vmem>>, vector<1x8x512xf32>,
    return
  }
  func.func @transform_0(%arg0: i32) -> (i32, i32, i32) {
    %c0_i32 = arith.constant 0 : i32
    %c0_i32_0 = arith.constant 0 : i32
    %c0_i32_1 = arith.constant 0 : i32
    return %arg0, %c0_i32, %c0_i32_0 : i32, i32, i32
  }
  func.func @transform_1(%arg0: i32) -> (i32, i32) {
    %c0_i32 = arith.constant 0 : i32
    %c0_i32_0 = arith.constant 0 : i32
    %c0_i32_1 = arith.constant 0 : i32
    return %c0_i32, %c0_i32_0 : i32, i32
  }
  func.func @transform_2(%arg0: i32) -> (i32, i32) {
    %c0_i32 = arith.constant 0 : i32
    %c0_i32_0 = arith.constant 0 : i32
    %c0_i32_1 = arith.constant 0 : i32
    return %c0_i32, %c0_i32_0 : i32, i32
  }
  func.func @transform_3(%arg0: i32) -> (i32, i32) {
    %c0_i32 = arith.constant 0 : i32
    %c0_i32_0 = arith.constant 0 : i32
    %c0_i32_1 = arith.constant 0 : i32
    return %c0_i32, %c0_i32_0 : i32, i32
  }
  func.func @transform_4(%arg0: i32) -> (i32, i32) {
    %c0_i32 = arith.constant 0 : i32
    %c0_i32_0 = arith.constant 0 : i32
    %c0_i32_1 = arith.constant 0 : i32
    return %c0_i32, %c0_i32_0 : i32, i32
  }
  func.func @transform_5(%arg0: i32) -> (i32, i32) {
    %c0_i32 = arith.constant 0 : i32
    %c0_i32_0 = arith.constant 0 : i32
    %c0_i32_1 = arith.constant 0 : i32
    return %c0_i32, %c0_i32_0 : i32, i32
  }
  func.func @transform_6(%arg0: i32) -> (i32, i32) {
    %c0_i32 = arith.constant 0 : i32
    %c0_i32_0 = arith.constant 0 : i32
    %c0_i32_1 = arith.constant 0 : i32
    return %c0_i32, %c0_i32_0 : i32, i32
  }
  func.func @transform_7(%arg0: i32) -> (i32, i32) {
    %c0_i32 = arith.constant 0 : i32
    %c0_i32_0 = arith.constant 0 : i32
    %c0_i32_1 = arith.constant 0 : i32
    return %c0_i32, %c0_i32_0 : i32, i32
  }
  func.func @transform_8(%arg0: i32) -> (i32, i32) {
    %c0_i32 = arith.constant 0 : i32
    %c0_i32_0 = arith.constant 0 : i32
    %c0_i32_1 = arith.constant 0 : i32
    return %c0_i32, %c0_i32_0 : i32, i32
  }
  func.func @transform_9(%arg0: i32) -> (i32, i32) {
    %c0_i32 = arith.constant 0 : i32
    %c0_i32_0 = arith.constant 0 : i32
    %c0_i32_1 = arith.constant 0 : i32
    return %c0_i32, %c0_i32_0 : i32, i32
  }
  func.func @transform_10(%arg0: i32) -> (i32, i32, i32) {
    %c0_i32 = arith.constant 0 : i32
    %c0_i32_0 = arith.constant 0 : i32
    %c0_i32_1 = arith.constant 0 : i32
    return %arg0, %c0_i32, %c0_i32_0 : i32, i32, i32
  }
}

</mosaic_0001>

<bundles_post_ra>
// kernel: tpu_custom_call.1
= control target key start
LH: loop header
LB: loop body
LE: loop exit
PB: predicated region body
PF: predicated region fallthrough
CT: control target
= control target key end

     0   :  { %vm85_vm0 = vcmask 1043456   ;;  %v2987_v6 = vmov 0   ;;  %vm78_vm1 = vcmask 64512   ;;  %v2990_v11 = vmov 1   ;;  %s2971_s0 = inlined_call_operand.vmem [shape: bf16[1,8,512], index: 0, kind: input, shape index: {}]   ;;  %s2972_s1 = inlined_call_operand.vmem [shape: bf16[24,8], index: 1, kind: input, shape index: {}]   ;;  %s2973_s2 = inlined_call_operand.vmem [shape: f32[24,1], index: 2, kind: input, shape index: {}]   ;;  %s2974_s3 = inlined_call_operand.vmem [shape: f32[24,9], index: 3, kind: input, shape index: {}]   ;;  %s2975_s4 = inlined_call_operand.vmem [shape: f32[24,1], index: 4, kind: input, shape index: {}]   ;;  %s2976_s5 = inlined_call_operand.vmem [shape: f32[9,512], index: 5, kind: input, shape index: {}]   ;;  %s2977_s6 = inlined_call_operand.vmem [shape: bf16[8,8], index: 6, kind: input, shape index: {}]   ;;  %s2978_s7 = inlined_call_operand.vmem [shape: f32[8,1], index: 7, kind: input, shape index: {}]   ;;  %s2979_s8 = inlined_call_operand.vmem [shape: f32[8,1], index: 8, kind: input, shape index: {}]   ;;  %s2980_s9 = inlined_call_operand.vmem [shape: f32[8,8], index: 9, kind: input, shape index: {}]   ;;  %s2981_s10 = inlined_call_operand.hbm [shape: f32[1,8,512], index: 10, kind: output, shape index: {}]  }
   0x1   :  { %v37_v0 = vld [vmem:[%s2971_s0] sm:$0xff]  ;;  %v38_v1 = vld [vmem:[%s2971_s0 + $0x8] sm:$0xff]  ;;  %130 = vmatprep.mubr.bf16.mxu0 %v2987_v6  ;;  %181 = vmatprep.mubr.bf16.mxu1 %v2987_v6  ;;  %v2991_v12 = vmov 4  }
   0x2   :  { %v1470_v2 = vcombine.high %v37_v0, %v37_v0  ;;  %v1472_v3 = vcombine.high %v38_v1, %v38_v1  ;;  %v1469_v4 = vcombine.low %v37_v0, %v37_v0  ;;  %v1471_v5 = vcombine.low %v38_v1, %v38_v1  ;;  %v1542_v9 = vld [vmem:[%s2972_s1] sm:$0xff]   ;;  %v201_v10 = vld [vmem:[%s2974_s3 + $0x8] sm:$0xff]  ;;  %1511 = vset.pattern.permute.xlu0 %v2990_v11 }
   0x3   :  { %1509 = vset.pattern.permute.xlu1 %v2991_v12 }
   0x4   :  { %1473 = vmatprep.subr.msk.bf16.mxu0 %vm85_vm0, %v1470_v2  ;;  %1476 = vmatprep.subr.msk.bf16.mxu1 %vm85_vm0, %v1472_v3  ;;  %v87_v7 = vsel %vm85_vm0, %v1469_v4, 0  ;;  %v93_v8 = vsel %vm85_vm0, %v1471_v5, 0 }
   0x5   :  { %99 = vmatpush1.bf16.msra.mxu0 %v87_v7  ;;  %150 = vmatpush1.bf16.msra.mxu1 %v93_v8 }
   0x6   :  { %15 = vsyncpa [#allocation3], 0  ;;  %411 = vperm.xlu0 %1511, %v201_v10   ;;  %218 = vperm.xlu1 %1509, %v201_v10   ;;  %v200_v13 = vld [vmem:[%s2974_s3] sm:$0xff]  ;;  %v2985_v14 = vmov 5   ;;  %v2989_v15 = vmov 2   ;;  %v2984_v16 = vmov 6   ;;  %v262_v4 = vlaneseq }
   0x7   :  { %v2986_v17 = vmov 3   ;;  %v2982_v18 = vmov 8   ;;  %v2983_v19 = vmov 7   ;;  %v43_v20 = vld [vmem:[%s2973_s2 + $0x8] sm:$0xff]  ;;  %v42_v21 = vld [vmem:[%s2973_s2] sm:$0xff]  ;;  %s1594_s28 = smov 1  }
   0x8   :  { %1474 = vmatmul.mubr.msk.bf16.vlgmr.msra.gmra.mrb[0].mxu0 %vm78_vm1, %v1542_v9  ;;  %1477 = vmatmul.mubr.msk.bf16.vlgmr.msra.gmra.mrb[0].mxu1 %vm78_vm1, %v1542_v9  ;;  %v1049_v22 = vld [vmem:[%s2975_s4 + $0x8] sm:$0xff]  ;;  %s1595_s29 = smov 17   ;;  %s1596_s30 = smov 113   ;;  %v1048_v58 = vld [vmem:[%s2975_s4] sm:$0xff]  ;;  %v1912_v8 = vshrl.u32 %v262_v4, 7 }
   0x9   :  { %140 = vmatprep.mubr.bf16.mxu0 %v2987_v6  ;;  %191 = vmatprep.mubr.bf16.mxu1 %v2987_v6  ;;  %s1597_s11 = smov 16   ;;  %s1598_s12 = smov 15   ;;  %v1543_v53 = vld [vmem:[%s2972_s1 + $0x8] ss:$0 sps:$4 sm:$0xff]  }
   0xa   :  { %1514 = vset.pattern.permute.xlu0 %v2991_v12  ;;  %1510 = vset.pattern.permute.xlu1 %v2987_v6  ;;  %s1599_s13 = smov 112   ;;  %s1600_s14 = smov 127  }
   0xb   :  { %213 = vperm.xlu0 %1514, %v200_v13   ;;  %310 = vperm.xlu1 %1510, %v201_v10   ;;  %s1601_s15 = smov 111  }
   0xf   :  { %1516 = vset.pattern.permute.xlu0 %v2985_v14  ;;  %1512 = vset.pattern.permute.xlu1 %v2989_v15 }
  0x10   :  { %714 = vperm.xlu0 %1516, %v201_v10   ;;  %512 = vperm.xlu1 %1512, %v201_v10  }
  0x11   :  { %1475 = vmatmul.mubr.msk.bf16.gmra.mrb[4].mxu0 %vm78_vm1, %v1543_v53  ;;  %1478 = vmatmul.mubr.msk.bf16.gmra.mrb[4].mxu1 %vm78_vm1, %v1543_v53 }
  0x12   :  { %1204 = vmatprep.mubr.bf16.mxu1 %v2987_v6 }
  0x14   :  { %1518 = vset.pattern.permute.xlu0 %v2984_v16  ;;  %1513 = vset.pattern.permute.xlu1 %v2986_v17 }
  0x15   :  { %815 = vperm.xlu0 %1518, %v201_v10   ;;  %613 = vperm.xlu1 %1513, %v201_v10  }
  0x19   :  { %1521 = vset.pattern.permute.xlu0 %v2982_v18  ;;  %1515 = vset.pattern.permute.xlu1 %v2987_v6 }
  0x1a   :  { %1017 = vperm.xlu0 %1521, %v201_v10   ;;  %306 = vperm.xlu1 %1515, %v200_v13  }
  0x1e   :  { %1522 = vset.pattern.permute.xlu0 %v2983_v19  ;;  %1517 = vset.pattern.permute.xlu1 %v2990_v11 }
  0x1f   :  { %916 = vperm.xlu0 %1522, %v201_v10   ;;  %407 = vperm.xlu1 %1517, %v200_v13  }
  0x23   :  { %912 = vperm.xlu0 %1522, %v200_v13   ;;  %1519 = vset.pattern.permute.xlu1 %v2989_v15 }
  0x24   :  { %508 = vperm.xlu1 %1519, %v200_v13  }
  0x27   :  { %1525 = vset.pattern.permute.xlu0 %v2987_v6 }
  0x28   :  { %52 = vperm.xlu0 %1525, %v43_v20   ;;  %1520 = vset.pattern.permute.xlu1 %v2986_v17  ;;  %v1923_v20 = vsub.s32 0, %v1912_v8 }
  0x29   :  { %609 = vperm.xlu1 %1520, %v200_v13  }
  0x2c   :  { %47 = vperm.xlu0 %1525, %v42_v21   ;;  %v1928_v21 = vld [vmem:[%s2976_s5 + $0x18] sm:$0xff] }
  0x2d   :  { %1523 = vset.pattern.permute.xlu1 %v2985_v14 }
  0x2e   :  { %710 = vperm.xlu1 %1523, %v200_v13  }
  0x30   :  { %1058 = vperm.xlu0 %1525, %v1049_v22  }
  0x32   :  { %1524 = vset.pattern.permute.xlu1 %v2984_v16 }
  0x33   :  { %811 = vperm.xlu1 %1524, %v200_v13  }
  0x37   :  { %1526 = vset.pattern.permute.xlu1 %v2982_v18 }
  0x38   :  { %1013 = vperm.xlu1 %1526, %v200_v13   ;;  %v1920_v13 = vand.u32 127, %v262_v4  ;;  %v1974_v4 = vsub.s32 2, %v1912_v8 }
  0x3a   :  { %vm264_vm2 = vcmp.lt.s32.totalorder %v1920_v13, 17  ;;  %vm365_vm3 = vcmp.lt.s32.totalorder %v1920_v13, 16  ;;  %vm466_vm4 = vcmp.lt.s32.totalorder %v1920_v13, 15  ;;  %v2000_v15 = vrot.slane %v1928_v21, %v1974_v4 }
  0x3b   :  { %vm567_vm5 = vcmp.lt.s32.totalorder %v1920_v13, 1  ;;  %vm668_vm6 = vcmp.lt.s32.totalorder %v1920_v13, 127  ;;  %vm971_vm7 = vcmp.lt.s32.totalorder %v1920_v13, 111  ;;  %vm769_vm8 = vcmp.lt.s32.totalorder %v1920_v13, 113 }
  0x3c   :  { %1527 = vset.pattern.permute.xlu1 %v2987_v6  ;;  %v1990_v6 = vsub.s32 3, %v1912_v8  ;;  %3079 = vst [vmem:[#allocation28_spill] sm:$0xff] %v2000_v15  ;;  %vm870_vm9 = vcmp.lt.s32.totalorder %v1920_v13, 112 }
  0x85   :  { %v1711_v23 = vpop.permute.xlu0 %411  ;;  %v1793_v48 = vpop.permute.xlu1 %218 }
  0x86   :  { %3056 = vst [vmem:[#allocation5_spill] sm:$0xff] %v1711_v23 }
  0x8a   :  { %v1713_v24 = vpop.permute.xlu0 %213  ;;  %v1799_v49 = vpop.permute.xlu1 %310 }
  0x8b   :  { %3061 = vst [vmem:[#allocation10_spill] sm:$0xff] %v1799_v49 }
  0x8f   :  { %v1715_v25 = vpop.permute.xlu0 %714  ;;  %v1809_v50 = vpop.permute.xlu1 %512 }
  0x90   :  { %3057 = vst [vmem:[#allocation6_spill] sm:$0xff] %v1715_v25  ;;  %3062 = vst [vmem:[#allocation11_spill] sm:$0xff] %v1809_v50 }
  0x94   :  { %v1717_v26 = vpop.permute.xlu0 %815  ;;  %v1815_v51 = vpop.permute.xlu1 %613 }
  0x95   :  { %3058 = vst [vmem:[#allocation7_spill] sm:$0xff] %v1717_v26  ;;  %3063 = vst [vmem:[#allocation12_spill] sm:$0xff] %v1815_v51 }
  0x99   :  { %v1719_v27 = vpop.permute.xlu0 %1017  ;;  %v1825_v52 = vpop.permute.xlu1 %306 }
  0x9a   :  { %3059 = vst [vmem:[#allocation8_spill] sm:$0xff] %v1719_v27 }
  0x9e   :  { %v1721_v28 = vpop.permute.xlu0 %916  ;;  %v1834_v54 = vpop.permute.xlu1 %407 }
  0x9f   :  { %3060 = vst [vmem:[#allocation9_spill] sm:$0xff] %v1721_v28 }
  0xa2   :  { %v1723_v29 = vpop.permute.xlu0 %912 }
  0xa3   :  { %v1847_v55 = vpop.permute.xlu1 %508 }
  0xa7   :  { %v53_v30 = vpop.permute.xlu0 %52 }
  0xa8   :  { %v1853_v56 = vpop.permute.xlu1 %609 }
  0xab   :  { %v48_v31 = vpop.permute.xlu0 %47 }
  0xad   :  { %v1863_v57 = vpop.permute.xlu1 %710 }
  0xae   :  { %3064 = vst [vmem:[#allocation13_spill] sm:$0xff] %v1863_v57 }
  0xaf   :  { %v1882_v61 = vpop.permute.xlu0 %1058 }
  0xb0   :  { %3067 = vst [vmem:[#allocation16_spill] sm:$0xff] %v1882_v61 }
  0xb2   :  { %v1872_v59 = vpop.permute.xlu1 %811 }
  0xb3   :  { %3065 = vst [vmem:[#allocation14_spill] sm:$0xff] %v1872_v59 }
  0xb7   :  { %v1880_v60 = vpop.permute.xlu1 %1013 }
  0xb8   :  { %3066 = vst [vmem:[#allocation15_spill] sm:$0xff] %v1880_v60 }
  0xdb   :  { %v132_v32 = vpop.f32.mrb[0].mxu0  ;;  %v183_v33 = vpop.f32.mrb[0].mxu1 }
  0xdc   :  { %v1725_v34 = vadd.f32 %v132_v32, %v48_v31  ;;  %v134_v35 = vpop.f32.mrb[1].mxu0  ;;  %v185_v36 = vpop.f32.mrb[1].mxu1  ;;  %v1739_v43 = vadd.f32 %v183_v33, %v48_v31  ;;  %v1944_v32 = vrot.slane %v1928_v21, %v1923_v20  ;;  %v1947_v33 = vsub.s32 1, %v1912_v8 }
  0xdd   :  { %v136_v37 = vpop.f32.mrb[2].mxu0  ;;  %v187_v38 = vpop.f32.mrb[2].mxu1  ;;  %v1757_v44 = vadd.f32 %v185_v36, %v48_v31  ;;  %v1771_v45 = vadd.f32 %v134_v35, %v48_v31  ;;  %v1937_v31 = vld [vmem:[%s2976_s5] sm:$0xff] }
  0xde   :  { %v138_v39 = vpop.f32.mrb[3].mxu0  ;;  %v189_v40 = vpop.f32.mrb[3].mxu1  ;;  %543 = vrot.lane.b32.xlu0 %v1725_v34, %s1594_s28  ;;  %238 = vrot.lane.b32.xlu1 %v1725_v34, %s1595_s29  ;;  %v1785_v46 = vadd.f32 %v136_v37, %v53_v30  ;;  %v1791_v47 = vadd.f32 %v187_v38, %v53_v30  ;;  %3074 = vst [vmem:[#allocation23_spill] sm:$0xff] %v1944_v32 }
  0xdf   :  { %v1731_v41 = vadd.f32 %v138_v39, %v53_v30  ;;  %v1733_v42 = vadd.f32 %v189_v40, %v53_v30  ;;  %v1951_v35 = vrot.slane %v1937_v31, %v1923_v20  ;;  %v1967_v53 = vrot.slane %v1937_v31, %v1947_v33 }
  0xe1   :  { %3075 = vst [vmem:[#allocation24_spill] sm:$0xff] %v1951_v35  ;;  %3076 = vst [vmem:[#allocation25_spill] sm:$0xff] %v1967_v53 }
  0xe2   :  { %745 = vrot.lane.b32.xlu0 %v1725_v34, %s1596_s30  ;;  %341 = vrot.lane.b32.xlu1 %v1725_v34, %s1597_s11 }
  0xe6   :  { %757 = vrot.lane.b32.xlu0 %v1739_v43, %s1596_s30  ;;  %442 = vrot.lane.b32.xlu1 %v1725_v34, %s1598_s12 }
  0xea   :  { %846 = vrot.lane.b32.xlu0 %v1725_v34, %s1599_s13  ;;  %250 = vrot.lane.b32.xlu1 %v1739_v43, %s1595_s29 }
  0xee   :  { %858 = vrot.lane.b32.xlu0 %v1739_v43, %s1599_s13  ;;  %644 = vrot.lane.b32.xlu1 %v1725_v34, %s1600_s14 }
  0xf2   :  { %555 = vrot.lane.b32.xlu0 %v1739_v43, %s1594_s28  ;;  %656 = vrot.lane.b32.xlu1 %v1739_v43, %s1600_s14 }
  0xf6   :  { %256 = vrot.lane.b32.xlu0 %v1757_v44, %s1595_s29  ;;  %353 = vrot.lane.b32.xlu1 %v1739_v43, %s1597_s11 }
  0xfa   :  { %359 = vrot.lane.b32.xlu0 %v1757_v44, %s1597_s11  ;;  %454 = vrot.lane.b32.xlu1 %v1739_v43, %s1598_s12 }
  0xfe   :  { %460 = vrot.lane.b32.xlu0 %v1757_v44, %s1598_s12  ;;  %947 = vrot.lane.b32.xlu1 %v1725_v34, %s1601_s15 }
 0x102   :  { %561 = vrot.lane.b32.xlu0 %v1757_v44, %s1594_s28  ;;  %244 = vrot.lane.b32.xlu1 %v1771_v45, %s1595_s29 }
 0x106   :  { %650 = vrot.lane.b32.xlu0 %v1771_v45, %s1600_s14  ;;  %347 = vrot.lane.b32.xlu1 %v1771_v45, %s1597_s11 }
 0x10a   :  { %953 = vrot.lane.b32.xlu0 %v1771_v45, %s1601_s15  ;;  %448 = vrot.lane.b32.xlu1 %v1771_v45, %s1598_s12 }
 0x10e   :  { %343 = vrot.lane.b32.xlu0 %v1785_v46, %s1597_s11  ;;  %549 = vrot.lane.b32.xlu1 %v1771_v45, %s1594_s28 }
 0x112   :  { %252 = vrot.lane.b32.xlu0 %v1791_v47, %s1595_s29  ;;  %751 = vrot.lane.b32.xlu1 %v1771_v45, %s1596_s30 }
 0x116   :  { %355 = vrot.lane.b32.xlu0 %v1791_v47, %s1597_s11  ;;  %852 = vrot.lane.b32.xlu1 %v1771_v45, %s1599_s13 }
 0x11a   :  { %456 = vrot.lane.b32.xlu0 %v1791_v47, %s1598_s12  ;;  %240 = vrot.lane.b32.xlu1 %v1785_v46, %s1595_s29 }
 0x11e   :  { %557 = vrot.lane.b32.xlu0 %v1791_v47, %s1594_s28  ;;  %444 = vrot.lane.b32.xlu1 %v1785_v46, %s1598_s12 }
 0x122   :  { %258 = vrot.lane.b32.xlu0 %v1733_v42, %s1595_s29  ;;  %545 = vrot.lane.b32.xlu1 %v1785_v46, %s1594_s28 }
 0x126   :  { %361 = vrot.lane.b32.xlu0 %v1733_v42, %s1597_s11  ;;  %646 = vrot.lane.b32.xlu1 %v1785_v46, %s1600_s14 }
 0x12a   :  { %450 = vrot.lane.b32.xlu0 %v1731_v41, %s1598_s12  ;;  %658 = vrot.lane.b32.xlu1 %v1791_v47, %s1600_s14 }
 0x12e   :  { %551 = vrot.lane.b32.xlu0 %v1731_v41, %s1594_s28  ;;  %747 = vrot.lane.b32.xlu1 %v1785_v46, %s1596_s30 }
 0x132   :  { %652 = vrot.lane.b32.xlu0 %v1731_v41, %s1600_s14  ;;  %759 = vrot.lane.b32.xlu1 %v1791_v47, %s1596_s30 }
 0x136   :  { %753 = vrot.lane.b32.xlu0 %v1731_v41, %s1596_s30  ;;  %848 = vrot.lane.b32.xlu1 %v1785_v46, %s1599_s13 }
 0x13a   :  { %854 = vrot.lane.b32.xlu0 %v1731_v41, %s1599_s13  ;;  %860 = vrot.lane.b32.xlu1 %v1791_v47, %s1599_s13 }
 0x13e   :  { %955 = vrot.lane.b32.xlu0 %v1731_v41, %s1601_s15  ;;  %949 = vrot.lane.b32.xlu1 %v1785_v46, %s1601_s15 }
 0x142   :  { %765 = vrot.lane.b32.xlu0 %v1733_v42, %s1596_s30  ;;  %961 = vrot.lane.b32.xlu1 %v1791_v47, %s1601_s15 }
 0x146   :  { %1053 = vperm.xlu0 %1525, %v1048_v58   ;;  %246 = vrot.lane.b32.xlu1 %v1731_v41, %s1595_s29  ;;  %v1971_v58 = vrot.slane %v1928_v21, %v1947_v33 }
 0x148   :  { %3077 = vst [vmem:[#allocation26_spill] sm:$0xff] %v1971_v58 }
 0x14a   :  { %763 = vrot.lane.b32.xlu0 %v1757_v44, %s1596_s30  ;;  %349 = vrot.lane.b32.xlu1 %v1731_v41, %s1597_s11 }
 0x14e   :  { %965 = vrot.lane.b32.xlu0 %v1757_v44, %s1601_s15  ;;  %462 = vrot.lane.b32.xlu1 %v1733_v42, %s1598_s12 }
 0x150   :  { %v1888_v62 = vpop.permute.xlu0 %543  ;;  %v1890_v63 = vpop.permute.xlu1 %238 }
 0x152   :  { %563 = vrot.lane.b32.xlu1 %v1733_v42, %s1594_s28 }
 0x154   :  { %v1894_v0 = vpop.permute.xlu0 %745  ;;  %v1896_v1 = vpop.permute.xlu1 %341 }
 0x155   :  { %3068 = vst [vmem:[#allocation17_spill] sm:$0xff] %v1894_v0 }
 0x156   :  { %959 = vrot.lane.b32.xlu1 %v1739_v43, %s1601_s15 }
 0x158   :  { %v1900_v2 = vpop.permute.xlu0 %757  ;;  %v1902_v3 = vpop.permute.xlu1 %442 }
 0x159   :  { %3069 = vst [vmem:[#allocation18_spill] sm:$0xff] %v1900_v2 }
 0x15a   :  { %664 = vrot.lane.b32.xlu1 %v1733_v42, %s1600_s14 }
 0x15c   :  { %v1906_v5 = vpop.permute.xlu0 %846  ;;  %v1908_v7 = vpop.permute.xlu1 %250 }
 0x15d   :  { %3070 = vst [vmem:[#allocation19_spill] sm:$0xff] %v1906_v5 }
 0x15e   :  { %866 = vrot.lane.b32.xlu1 %v1733_v42, %s1599_s13 }
 0x160   :  { %v1914_v9 = vpop.permute.xlu0 %858  ;;  %v1916_v10 = vpop.permute.xlu1 %644 }
 0x161   :  { %3071 = vst [vmem:[#allocation20_spill] sm:$0xff] %v1914_v9  ;;  %3072 = vst [vmem:[#allocation21_spill] sm:$0xff] %v1916_v10 }
 0x162   :  { %967 = vrot.lane.b32.xlu1 %v1733_v42, %s1601_s15 }
 0x164   :  { %v1930_v22 = vpop.permute.xlu0 %555  ;;  %v1932_v30 = vpop.permute.xlu1 %656 }
 0x165   :  { %3073 = vst [vmem:[#allocation22_spill] sm:$0xff] %v1932_v30 }
 0x166   :  { %662 = vrot.lane.b32.xlu1 %v1757_v44, %s1600_s14 }
 0x168   :  { %v257_v36 = vpop.permute.xlu0 %256  ;;  %v1953_v37 = vpop.permute.xlu1 %353 }
 0x169   :  { %v265_v38 = vsel %vm264_vm2, %v1908_v7, %v257_v36  ;;  %v274_v39 = vsel %vm264_vm2, %v257_v36, %v1890_v63  ;;  %v229_v36 = vmul.f32 %v1713_v24, %v1757_v44 }
 0x16a   :  { %v296_v40 = vmul.f32 %v1944_v32, %v265_v38  ;;  %864 = vrot.lane.b32.xlu1 %v1757_v44, %s1599_s13  ;;  %v293_v18 = vmul.f32 %v1951_v35, %v274_v39 }
 0x16c   :  { %v320_v38 = vmul.f32 %v1825_v52, %v296_v40  ;;  %v360_v19 = vpop.permute.xlu0 %359  ;;  %v1980_v16 = vpop.permute.xlu1 %454  ;;  %v1996_v40 = vrot.slane %v1937_v31, %v1974_v4  ;;  %v317_v11 = vmul.f32 %v1825_v52, %v293_v18  ;;  %v2021_v18 = vrot.slane %v1928_v21, %v1990_v6 }
 0x16d   :  { %v366_v14 = vsel %vm365_vm3, %v1953_v37, %v360_v19  ;;  %v375_v17 = vsel %vm365_vm3, %v360_v19, %v1896_v1  ;;  %v226_v19 = vmul.f32 %v1713_v24, %v1725_v34  ;;  %v2017_v34 = vrot.slane %v1937_v31, %v1990_v6 }
 0x16e   :  { %v394_v44 = vmul.f32 %v1967_v53, %v375_v17  ;;  %v397_v39 = vmul.f32 %v1971_v58, %v366_v14  ;;  %3078 = vst [vmem:[#allocation27_spill] sm:$0xff] %v1996_v40  ;;  %v332_v12 = vadd.f32 %v320_v38, %v229_v36  ;;  %3082 = vst [vmem:[#allocation31_spill] sm:$0xff] %v2021_v18  ;;  %v2026_v36 = vld [vmem:[%s2976_s5 + $0x8] sm:$0xff] }
 0x16f   :  { %3081 = vst [vmem:[#allocation30_spill] sm:$0xff] %v2017_v34  ;;  %v329_v25 = vadd.f32 %v317_v11, %v226_v19  ;;  %v2035_v60 = vrot.slane %v2026_v36, %v1923_v20 }
 0x170   :  { %v421_v61 = vmul.f32 %v1834_v54, %v397_v39  ;;  %v461_v27 = vpop.permute.xlu0 %460  ;;  %v2006_v17 = vpop.permute.xlu1 %947  ;;  %v418_v38 = vmul.f32 %v1834_v54, %v394_v44 }
 0x171   :  { %3080 = vst [vmem:[#allocation29_spill] sm:$0xff] %v2006_v17  ;;  %v467_v14 = vsel %vm466_vm4, %v1980_v16, %v461_v27  ;;  %v476_v28 = vsel %vm466_vm4, %v461_v27, %v1902_v3  ;;  %3083 = vst [vmem:[#allocation32_spill] sm:$0xff] %v2035_v60 }
 0x172   :  { %v433_v39 = vadd.f32 %v421_v61, %v332_v12  ;;  %v495_v26 = vmul.f32 %v1996_v40, %v476_v28  ;;  %v498_v27 = vmul.f32 %v2000_v15, %v467_v14  ;;  %v2053_v14 = vrot.slane %v2026_v36, %v1947_v33 }
 0x174   :  { %v519_v51 = vmul.f32 %v1847_v55, %v495_v26  ;;  %v522_v50 = vmul.f32 %v1847_v55, %v498_v27  ;;  %v562_v23 = vpop.permute.xlu0 %561  ;;  %v2037_v58 = vpop.permute.xlu1 %244  ;;  %v430_v26 = vadd.f32 %v418_v38, %v329_v25  ;;  %3084 = vst [vmem:[#allocation33_spill] sm:$0xff] %v2053_v14  ;;  %v2067_v38 = vrot.slane %v2026_v36, %v1974_v4 }
 0x175   :  { %v568_v12 = vsel %vm567_vm5, %v1930_v22, %v562_v23  ;;  %v577_v28 = vsel %vm567_vm5, %v562_v23, %v1888_v62  ;;  %v271_v11 = vsel %vm264_vm2, %v1890_v63, %v2037_v58 }
 0x176   :  { %v534_v61 = vadd.f32 %v522_v50, %v433_v39  ;;  %v596_v44 = vmul.f32 %v2017_v34, %v577_v28  ;;  %v599_v19 = vmul.f32 %v2021_v18, %v568_v12  ;;  %v531_v27 = vadd.f32 %v519_v51, %v430_v26  ;;  %3086 = vst [vmem:[#allocation35_spill] sm:$0xff] %v2067_v38 }
 0x177   :  { %v294_v40 = vmul.f32 %v2035_v60, %v271_v11  ;;  %v2084_v26 = vrot.slane %v2026_v36, %v1990_v6  ;;  %v2134_v60 = vmul.f32 %v1793_v48, %v1785_v46  ;;  %v2154_v46 = vmul.f32 %v1793_v48, %v1733_v42 }
 0x178   :  { %v620_v15 = vmul.f32 %v1853_v56, %v596_v44  ;;  %v623_v23 = vmul.f32 %v1853_v56, %v599_v19  ;;  %v651_v49 = vpop.permute.xlu0 %650  ;;  %v348_v53 = vpop.permute.xlu1 %347 }
 0x179   :  { %v372_v50 = vsel %vm365_vm3, %v1896_v1, %v348_v53  ;;  %v318_v51 = vmul.f32 %v1825_v52, %v294_v40  ;;  %v227_v1 = vmul.f32 %v1713_v24, %v1771_v45  ;;  %3088 = vst [vmem:[#allocation37_spill] sm:$0xff] %v2084_v26 }
 0x17a   :  { %v2058_v63 = vadd.f32 %v620_v15, %v531_v27  ;;  %v2060_v25 = vadd.f32 %v623_v23, %v534_v61  ;;  %v395_v39 = vmul.f32 %v2053_v14, %v372_v50 }
 0x17b   :  { %v330_v61 = vadd.f32 %v318_v51, %v227_v1 }
 0x17c   :  { %3085 = vst [vmem:[#allocation34_spill] sm:$0xff] %v2060_v25  ;;  %v2071_v12 = vpop.permute.xlu0 %953  ;;  %v2073_v28 = vpop.permute.xlu1 %448  ;;  %v419_v11 = vmul.f32 %v1834_v54, %v395_v39 }
 0x17d   :  { %3087 = vst [vmem:[#allocation36_spill] sm:$0xff] %v2071_v12  ;;  %v473_v15 = vsel %vm466_vm4, %v1902_v3, %v2073_v28 }
 0x17e   :  { %v496_v40 = vmul.f32 %v2067_v38, %v473_v15  ;;  %v431_v3 = vadd.f32 %v419_v11, %v330_v61 }
 0x180   :  { %v2087_v44 = vpop.permute.xlu0 %343  ;;  %v2089_v19 = vpop.permute.xlu1 %549  ;;  %v520_v27 = vmul.f32 %v1847_v55, %v496_v40 }
 0x181   :  { %v574_v45 = vsel %vm567_vm5, %v1888_v62, %v2089_v19 }
 0x182   :  { %v597_v23 = vmul.f32 %v2084_v26, %v574_v45  ;;  %v532_v50 = vadd.f32 %v520_v27, %v431_v3  ;;  %v683_v26 = vsub.s32 5, %v1912_v8 }
 0x184   :  { %v621_v39 = vmul.f32 %v1853_v56, %v597_v23  ;;  %v2098_v25 = vpop.permute.xlu0 %252  ;;  %v752_v51 = vpop.permute.xlu1 %751 }
 0x186   :  { %v2100_v15 = vadd.f32 %v621_v39, %v532_v50  ;;  %v2129_v39 = vld [vmem:[%s2976_s5 + $0x10] sm:$0xff] }
 0x187   :  { %v2175_v42 = vrot.slane %v2129_v39, %v1947_v33  ;;  %v2194_v33 = vrot.slane %v2129_v39, %v1990_v6 }
 0x188   :  { %v2102_v1 = vpop.permute.xlu0 %355  ;;  %v853_v18 = vpop.permute.xlu1 %852 }
 0x189   :  { %3099 = vst [vmem:[#allocation48_spill] sm:$0xff] %v2175_v42  ;;  %3101 = vst [vmem:[#allocation50_spill] sm:$0xff] %v2194_v33 }
 0x18c   :  { %v2104_v40 = vpop.permute.xlu0 %456  ;;  %v2106_v34 = vpop.permute.xlu1 %240 }
 0x190   :  { %v2108_v14 = vpop.permute.xlu0 %557  ;;  %v2110_v62 = vpop.permute.xlu1 %444 }
 0x191   :  { %3089 = vst [vmem:[#allocation38_spill] sm:$0xff] %v2108_v14 }
 0x194   :  { %v2112_v11 = vpop.permute.xlu0 %258  ;;  %v2114_v61 = vpop.permute.xlu1 %545 }
 0x195   :  { %3090 = vst [vmem:[#allocation39_spill] sm:$0xff] %v2114_v61  ;;  %v2150_v61 = vmul.f32 %v1793_v48, %v1731_v41  ;;  %v2171_v41 = vrot.slane %v2026_v36, %v683_v26 }
 0x197   :  { %3096 = vst [vmem:[#allocation45_spill] sm:$0xff] %v2150_v61  ;;  %3098 = vst [vmem:[#allocation47_spill] sm:$0xff] %v2171_v41 }
 0x198   :  { %v2116_v27 = vpop.permute.xlu0 %361  ;;  %v2118_v45 = vpop.permute.xlu1 %646 }
 0x199   :  { %3091 = vst [vmem:[#allocation40_spill] sm:$0xff] %v2118_v45  ;;  %v784_v45 = vsub.s32 6, %v1912_v8 }
 0x19b   :  { %v2203_v61 = vrot.slane %v2026_v36, %v784_v45 }
 0x19c   :  { %v2120_v3 = vpop.permute.xlu1 %658  ;;  %v2122_v23 = vpop.permute.xlu0 %450 }
 0x19d   :  { %3092 = vst [vmem:[#allocation41_spill] sm:$0xff] %v2120_v3  ;;  %v2140_v3 = vmul.f32 %v1793_v48, %v1791_v47  ;;  %v2158_v47 = vrot.slane %v2129_v39, %v1923_v20  ;;  %v675_v48 = vsel %vm668_vm6, %v1916_v10, %v651_v49  ;;  %v369_v20 = vsel %vm365_vm3, %v348_v53, %v1953_v37 }
 0x19e   :  { %3104 = vst [vmem:[#allocation53_spill] sm:$0xff] %v2203_v61  ;;  %v776_v53 = vsel %vm769_vm8, %v1894_v0, %v752_v51  ;;  %v773_v0 = vsel %vm769_vm8, %v752_v51, %v1900_v2  ;;  %v874_v51 = vsel %vm870_vm9, %v853_v18, %v1914_v9 }
 0x19f   :  { %3094 = vst [vmem:[#allocation43_spill] sm:$0xff] %v2140_v3  ;;  %v2168_v3 = vrot.slane %v1937_v31, %v683_v26 }
 0x1a0   :  { %v2124_v50 = vpop.permute.xlu1 %747  ;;  %v2136_v14 = vpop.permute.xlu0 %551 }
 0x1a1   :  { %3093 = vst [vmem:[#allocation42_spill] sm:$0xff] %v2124_v50  ;;  %v228_v50 = vmul.f32 %v1713_v24, %v1739_v43  ;;  %v2161_v24 = vsub.s32 7, %v1912_v8  ;;  %v268_v43 = vsel %vm264_vm2, %v2037_v58, %v1908_v7  ;;  %3097 = vst [vmem:[#allocation46_spill] sm:$0xff] %v2168_v3  ;;  %v2183_v8 = vrot.slane %v2129_v39, %v1974_v4 }
 0x1a2   :  { %v672_v7 = vsel %vm668_vm6, %v651_v49, %v1932_v30  ;;  %v2197_v58 = vrot.slane %v1937_v31, %v784_v45  ;;  %v295_v4 = vmul.f32 %v2158_v47, %v268_v43  ;;  %v697_v6 = vmul.f32 %v2168_v3, %v675_v48 }
 0x1a3   :  { %3100 = vst [vmem:[#allocation49_spill] sm:$0xff] %v2183_v8  ;;  %v2208_v49 = vrot.slane %v1937_v31, %v2161_v24  ;;  %v2218_v43 = vrot.slane %v2026_v36, %v2161_v24  ;;  %v2221_v30 = vrot.slane %v2129_v39, %v784_v45  ;;  %v396_v31 = vmul.f32 %v2175_v42, %v369_v20 }
 0x1a4   :  { %v2146_v38 = vpop.permute.xlu1 %759  ;;  %3102 = vst [vmem:[#allocation51_spill] sm:$0xff] %v2197_v58  ;;  %v2210_v37 = vpop.permute.xlu0 %652  ;;  %v470_v48 = vsel %vm466_vm4, %v2073_v28, %v1980_v16  ;;  %v877_v36 = vsel %vm870_vm9, %v1906_v5, %v853_v18  ;;  %v2244_v20 = vrot.slane %v1928_v21, %v683_v26  ;;  %v319_v16 = vmul.f32 %v1825_v52, %v295_v4 }
 0x1a5   :  { %3095 = vst [vmem:[#allocation44_spill] sm:$0xff] %v2146_v38  ;;  %3105 = vst [vmem:[#allocation54_spill] sm:$0xff] %v2208_v49  ;;  %v798_v28 = vmul.f32 %v2197_v58, %v776_v53  ;;  %v721_v5 = vmul.f32 %v1863_v57, %v697_v6  ;;  %v978_v52 = vsel %vm971_vm7, %v2006_v17, %v2071_v12 }
 0x1a6   :  { %3106 = vst [vmem:[#allocation55_spill] sm:$0xff] %v2218_v43  ;;  %3107 = vst [vmem:[#allocation56_spill] sm:$0xff] %v2221_v30  ;;  %v2238_v30 = vrot.slane %v1928_v21, %v784_v45  ;;  %v275_v45 = vsel %vm264_vm2, %v2112_v11, %v2106_v34  ;;  %v497_v4 = vmul.f32 %v2183_v8, %v470_v48 }
 0x1a7   :  { %3110 = vst [vmem:[#allocation59_spill] sm:$0xff] %v2244_v20  ;;  %v799_v18 = vmul.f32 %v2203_v61, %v773_v0  ;;  %v420_v9 = vmul.f32 %v1834_v54, %v396_v31  ;;  %v571_v6 = vsel %vm567_vm5, %v2089_v19, %v1930_v22  ;;  %v899_v2 = vmul.f32 %v2208_v49, %v877_v36 }
 0x1a8   :  { %v2199_v10 = vpop.permute.xlu1 %848  ;;  %3108 = vst [vmem:[#allocation57_spill] sm:$0xff] %v2238_v30  ;;  %v2274_v20 = vpop.permute.xlu0 %753  ;;  %v266_v0 = vsel %vm264_vm2, %v2098_v25, %v2112_v11  ;;  %v376_v54 = vsel %vm365_vm3, %v2116_v27, %v2087_v44  ;;  %v331_v22 = vadd.f32 %v319_v16, %v228_v50  ;;  %v822_v48 = vmul.f32 %v1872_v59, %v798_v28  ;;  %v3111_v28 = vld [vmem:[#allocation25_spill] sm:$0xff] }
 0x1a9   :  { %3103 = vst [vmem:[#allocation52_spill] sm:$0xff] %v2199_v10  ;;  %v698_v10 = vmul.f32 %v2171_v41, %v672_v7  ;;  %v2241_v7 = vrot.slane %v2129_v39, %v683_v26  ;;  %v2259_v26 = vld [vmem:[%s2976_s5 + $0x20] ss:$0 sm:$0xff]  ;;  %v367_v36 = vsel %vm365_vm3, %v2102_v1, %v2116_v27  ;;  %v521_v11 = vmul.f32 %v1847_v55, %v497_v4  ;;  %v3112_v27 = vld [vmem:[#allocation10_spill] sm:$0xff] }
 0x1aa   :  { %v1000_v19 = vmul.f32 %v2259_v26, %v978_v52  ;;  %v923_v50 = vmul.f32 %v1723_v29, %v899_v2  ;;  %v300_v16 = vmul.f32 %v1944_v32, %v266_v0  ;;  %v398_v52 = vmul.f32 %v3111_v28, %v376_v54  ;;  %v3113_v55 = vld [vmem:[#allocation26_spill] sm:$0xff] }
 0x1ab   :  { %3109 = vst [vmem:[#allocation58_spill] sm:$0xff] %v2241_v7  ;;  %v722_v53 = vmul.f32 %v1863_v57, %v698_v10  ;;  %v900_v7 = vmul.f32 %v2218_v43, %v874_v51  ;;  %v297_v10 = vmul.f32 %v1951_v35, %v275_v45  ;;  %v598_v51 = vmul.f32 %v2194_v33, %v571_v6 }
 0x1ac   :  { %v2235_v38 = vpop.permute.xlu1 %860  ;;  %v823_v35 = vmul.f32 %v1872_v59, %v799_v18  ;;  %v733_v57 = vadd.f32 %v721_v5, %v2058_v63  ;;  %v432_v17 = vadd.f32 %v420_v9, %v331_v22  ;;  %v401_v4 = vmul.f32 %v3113_v55, %v367_v36  ;;  %v855_v59 = vpop.permute.xlu0 %854 }
 0x1ad   :  { %v734_v45 = vadd.f32 %v722_v53, %v2100_v15  ;;  %v924_v30 = vmul.f32 %v1723_v29, %v900_v7  ;;  %v321_v12 = vmul.f32 %v3112_v27, %v297_v10  ;;  %v3114_v15 = vld [vmem:[#allocation15_spill] sm:$0xff]  ;;  %v2310_v2 = vrot.slane %v2129_v39, %v2161_v24  ;;  %v3115_v39 = vld [vmem:[#allocation5_spill] sm:$0xff] }
 0x1ae   :  { %v1024_v53 = vmul.f32 %v3114_v15, %v1000_v19  ;;  %v834_v18 = vadd.f32 %v822_v48, %v733_v57  ;;  %v2314_v5 = vrot.slane %v1928_v21, %v2161_v24  ;;  %v2316_v9 = vadd.f32 %v521_v11, %v432_v17  ;;  %v3116_v24 = vld [vmem:[#allocation39_spill] sm:$0xff]  ;;  %v3118_v11 = vld [vmem:[#allocation38_spill] sm:$0xff] }
 0x1af   :  { %v2319_v63 = vmul.f32 %v1853_v56, %v598_v51  ;;  %v835_v7 = vadd.f32 %v823_v35, %v734_v45  ;;  %v474_v57 = vsel %vm466_vm4, %v2110_v62, %v2122_v23  ;;  %v324_v10 = vmul.f32 %v3112_v27, %v300_v16  ;;  %v3117_v48 = vld [vmem:[#allocation35_spill] sm:$0xff]  ;;  %v3120_v45 = vld [vmem:[#allocation41_spill] sm:$0xff]  ;;  %v3121_v16 = vld [vmem:[#allocation32_spill] sm:$0xff] }
 0x1b0   :  { %v2286_v31 = vpop.permute.xlu1 %949  ;;  %v935_v0 = vadd.f32 %v923_v50, %v834_v18  ;;  %v422_v54 = vmul.f32 %v3115_v39, %v398_v52  ;;  %v471_v21 = vsel %vm466_vm4, %v2122_v23, %v2104_v40  ;;  %v333_v56 = vadd.f32 %v321_v12, %v2134_v60  ;;  %v956_v55 = vpop.permute.xlu0 %955 }
 0x1b1   :  { %v2331_v17 = vadd.f32 %v924_v30, %v835_v7  ;;  %v425_v35 = vmul.f32 %v3115_v39, %v401_v4  ;;  %v575_v22 = vsel %vm567_vm5, %v3116_v24, %v2136_v14  ;;  %v500_v36 = vmul.f32 %v3117_v48, %v474_v57  ;;  %v3119_v30 = vld [vmem:[#allocation40_spill] sm:$0xff]  ;;  %v3122_v7 = vld [vmem:[#allocation37_spill] sm:$0xff] }
 0x1b2   :  { %v572_v51 = vsel %vm567_vm5, %v2136_v14, %v3118_v11  ;;  %v676_v60 = vsel %vm668_vm6, %v3119_v30, %v2210_v37  ;;  %v501_v23 = vmul.f32 %v2183_v8, %v471_v21  ;;  %v673_v50 = vsel %vm668_vm6, %v2210_v37, %v3120_v45  ;;  %v3123_v37 = vld [vmem:[#allocation42_spill] sm:$0xff] }
 0x1b3   :  { %v336_v4 = vadd.f32 %v324_v10, %v2154_v46  ;;  %v434_v18 = vadd.f32 %v422_v54, %v333_v56  ;;  %v601_v57 = vmul.f32 %v3122_v7, %v575_v22  ;;  %v602_v21 = vmul.f32 %v2194_v33, %v572_v51  ;;  %v3124_v56 = vld [vmem:[#allocation11_spill] sm:$0xff] }
 0x1b4   :  { %v2305_v6 = vpop.permute.xlu1 %961  ;;  %v701_v8 = vmul.f32 %v2168_v3, %v676_v60  ;;  %v777_v32 = vsel %vm769_vm8, %v3123_v37, %v2274_v20  ;;  %v702_v46 = vmul.f32 %v2171_v41, %v673_v50  ;;  %v524_v22 = vmul.f32 %v3124_v56, %v500_v36  ;;  %v3125_v60 = vld [vmem:[#allocation33_spill] sm:$0xff]  ;;  %v3127_v41 = vld [vmem:[#allocation44_spill] sm:$0xff]  ;;  %v766_v7 = vpop.permute.xlu0 %765 }
 0x1b5   :  { %v2379_v54 = vadd.f32 %v425_v35, %v336_v4  ;;  %v525_v51 = vmul.f32 %v3124_v56, %v501_v23  ;;  %v3128_v35 = vld [vmem:[#allocation6_spill] sm:$0xff]  ;;  %v3129_v4 = vld [vmem:[#allocation45_spill] sm:$0xff]  ;;  %v3130_v3 = vld [vmem:[#allocation52_spill] sm:$0xff] }
 0x1b6   :  { %v725_v36 = vmul.f32 %v3128_v35, %v701_v8 }
 0x1b8   :  { %v247_v19 = vpop.permute.xlu1 %246 }
 0x1b9   :  { %v272_v12 = vsel %vm264_vm2, %v2106_v34, %v247_v19  ;;  %v269_v14 = vsel %vm264_vm2, %v247_v19, %v2098_v25  ;;  %v2362_v34 = vadd.f32 %v1024_v53, %v935_v0 }
 0x1ba   :  { %v298_v52 = vmul.f32 %v3121_v16, %v272_v12  ;;  %v299_v10 = vmul.f32 %v2158_v47, %v269_v14  ;;  %v774_v14 = vsel %vm769_vm8, %v2274_v20, %v3127_v41  ;;  %v878_v20 = vsel %vm870_vm9, %v3130_v3, %v855_v59 }
 0x1bb   :  { %v803_v8 = vmul.f32 %v2203_v61, %v774_v14 }
 0x1bc   :  { %v322_v25 = vmul.f32 %v3112_v27, %v298_v52  ;;  %v350_v19 = vpop.permute.xlu1 %349  ;;  %v3126_v52 = vld [vmem:[#allocation12_spill] sm:$0xff] }
 0x1bd   :  { %v370_v53 = vsel %vm365_vm3, %v350_v19, %v2102_v1  ;;  %v373_v0 = vsel %vm365_vm3, %v2087_v44, %v350_v19  ;;  %v625_v50 = vmul.f32 %v3126_v52, %v601_v57  ;;  %v802_v1 = vmul.f32 %v2197_v58, %v777_v32 }
 0x1be   :  { %v399_v12 = vmul.f32 %v3125_v60, %v373_v0  ;;  %v400_v33 = vmul.f32 %v2175_v42, %v370_v53  ;;  %v2392_v44 = vmul.f32 %v3126_v52, %v602_v21  ;;  %v334_v23 = vadd.f32 %v322_v25, %v3129_v4  ;;  %v3132_v4 = vld [vmem:[#allocation7_spill] sm:$0xff] }
 0x1bf   :  { %v726_v57 = vmul.f32 %v3128_v35, %v702_v46  ;;  %v323_v32 = vmul.f32 %v3112_v27, %v299_v10  ;;  %v826_v58 = vmul.f32 %v3132_v4, %v802_v1  ;;  %v875_v42 = vsel %vm870_vm9, %v855_v59, %v2235_v38 }
 0x1c0   :  { %v423_v19 = vmul.f32 %v3115_v39, %v399_v12  ;;  %v463_v0 = vpop.permute.xlu1 %462  ;;  %v3131_v12 = vld [vmem:[#allocation27_spill] sm:$0xff]  ;;  %v979_v27 = vsel %vm971_vm7, %v2286_v31, %v956_v55  ;;  %v903_v10 = vmul.f32 %v2208_v49, %v878_v20  ;;  %v3135_v20 = vld [vmem:[#allocation30_spill] sm:$0xff] }
 0x1c1   :  { %v477_v21 = vsel %vm466_vm4, %v463_v0, %v2110_v62  ;;  %v468_v25 = vsel %vm466_vm4, %v2104_v40, %v463_v0  ;;  %v424_v62 = vmul.f32 %v3115_v39, %v400_v33  ;;  %v771_v40 = vsel %vm769_vm8, %v3127_v41, %v766_v7 }
 0x1c2   :  { %v435_v53 = vadd.f32 %v423_v19, %v334_v23  ;;  %v499_v46 = vmul.f32 %v3131_v12, %v477_v21  ;;  %v3133_v19 = vld [vmem:[#allocation43_spill] sm:$0xff]  ;;  %v3134_v21 = vld [vmem:[#allocation28_spill] sm:$0xff]  ;;  %v904_v39 = vmul.f32 %v2218_v43, %v875_v42  ;;  %v1004_v41 = vmul.f32 %v2259_v26, %v979_v27  ;;  %v2446_v42 = vld [vmem:[%s2976_s5 + $0x28] ss:$0 sm:$0xff] }
 0x1c3   :  { %v335_v0 = vadd.f32 %v323_v32, %v3133_v19  ;;  %v502_v59 = vmul.f32 %v3134_v21, %v468_v25  ;;  %v780_v32 = vsel %vm769_vm8, %v766_v7, %v3123_v37  ;;  %v3136_v25 = vld [vmem:[#allocation56_spill] sm:$0xff]  ;;  %v3137_v27 = vld [vmem:[#allocation31_spill] sm:$0xff]  ;;  %v827_v7 = vmul.f32 %v3132_v4, %v803_v8  ;;  %v3138_v37 = vld [vmem:[#allocation9_spill] sm:$0xff] }
 0x1c4   :  { %v536_v14 = vadd.f32 %v524_v22, %v435_v53  ;;  %v523_v23 = vmul.f32 %v3124_v56, %v499_v46  ;;  %v564_v1 = vpop.permute.xlu1 %563  ;;  %v804_v19 = vmul.f32 %v3136_v25, %v771_v40  ;;  %v927_v40 = vmul.f32 %v3138_v37, %v903_v10 }
 0x1c5   :  { %v569_v61 = vsel %vm567_vm5, %v3118_v11, %v564_v1  ;;  %v578_v33 = vsel %vm567_vm5, %v564_v1, %v3116_v24  ;;  %v2434_v46 = vpop.permute.xlu0 %1053  ;;  %v976_v11 = vsel %vm971_vm7, %v956_v55, %v2305_v6  ;;  %v436_v24 = vadd.f32 %v424_v62, %v335_v0  ;;  %v3139_v62 = vld [vmem:[#allocation36_spill] sm:$0xff] }
 0x1c6   :  { %v637_v22 = vadd.f32 %v625_v50, %v536_v14  ;;  %v600_v53 = vmul.f32 %v3135_v20, %v578_v33  ;;  %v535_v50 = vadd.f32 %v523_v23, %v434_v18  ;;  %v603_v14 = vmul.f32 %v3137_v27, %v569_v61  ;;  %v3140_v18 = vld [vmem:[#allocation8_spill] sm:$0xff] }
 0x1c7   :  { %v526_v55 = vmul.f32 %v3124_v56, %v502_v59  ;;  %v1028_v23 = vmul.f32 %v3140_v18, %v1004_v41  ;;  %v828_v8 = vmul.f32 %v3132_v4, %v804_v19  ;;  %v1005_v10 = vmul.f32 %v2446_v42, %v976_v11  ;;  %v3142_v19 = vld [vmem:[#allocation58_spill] sm:$0xff] }
 0x1c8   :  { %v738_v26 = vadd.f32 %v726_v57, %v637_v22  ;;  %v624_v1 = vmul.f32 %v3126_v52, %v600_v53  ;;  %v2450_v33 = vpop.permute.xlu1 %959  ;;  %v928_v57 = vmul.f32 %v3138_v37, %v904_v39  ;;  %v3141_v53 = vld [vmem:[#allocation57_spill] sm:$0xff]  ;;  %v537_v49 = vadd.f32 %v525_v51, %v436_v24  ;;  %v3143_v24 = vld [vmem:[#allocation59_spill] sm:$0xff] }
 0x1c9   :  { %v975_v0 = vsel %vm971_vm7, %v3139_v62, %v2450_v33  ;;  %v805_v43 = vmul.f32 %v3141_v53, %v780_v32  ;;  %v627_v56 = vmul.f32 %v3126_v52, %v603_v14  ;;  %v764_v62 = vpop.permute.xlu0 %763  ;;  %v538_v41 = vadd.f32 %v526_v55, %v2379_v54 }
 0x1ca   :  { %v636_v61 = vadd.f32 %v624_v1, %v535_v50  ;;  %v1001_v22 = vmul.f32 %v2446_v42, %v975_v0  ;;  %v839_v39 = vadd.f32 %v827_v7, %v738_v26  ;;  %v2476_v51 = vadd.f32 %v2434_v46, %v2362_v34 }
 0x1cb   :  { %v829_v54 = vmul.f32 %v3132_v4, %v805_v43  ;;  %v1029_v14 = vmul.f32 %v3140_v18, %v1005_v10 }
 0x1cc   :  { %v737_v59 = vadd.f32 %v725_v36, %v636_v61  ;;  %v1025_v27 = vmul.f32 %v3114_v15, %v1001_v22  ;;  %v665_v20 = vpop.permute.xlu1 %664 }
 0x1cd   :  { %v670_v50 = vsel %vm668_vm6, %v3120_v45, %v665_v20  ;;  %v679_v32 = vsel %vm668_vm6, %v665_v20, %v3119_v30  ;;  %v3144_v45 = vld [vmem:[#allocation18_spill] sm:$0xff]  ;;  %v638_v30 = vadd.f32 %v2392_v44, %v537_v49  ;;  %v639_v20 = vadd.f32 %v627_v56, %v538_v41  ;;  %v3145_v49 = vld [vmem:[#allocation17_spill] sm:$0xff]  ;;  %v2511_v41 = vld [vmem:[%s2976_s5 + $0x30] ss:$0 sm:$0xff] }
 0x1ce   :  { %v838_v52 = vadd.f32 %v826_v58, %v737_v59  ;;  %v1037_v36 = vadd.f32 %v1025_v27, %v2331_v17  ;;  %v703_v11 = vmul.f32 %v3142_v19, %v670_v50  ;;  %v704_v26 = vmul.f32 %v3143_v24, %v679_v32  ;;  %v2516_v50 = vld [vmem:[%s2976_s5 + $0x38] ss:$0 sm:$0xff] }
 0x1cf   :  { %v770_v1 = vsel %vm769_vm8, %v3144_v45, %v764_v62  ;;  %v940_v27 = vadd.f32 %v928_v57, %v839_v39  ;;  %v779_v44 = vsel %vm769_vm8, %v764_v62, %v3145_v49  ;;  %v1080_v57 = vmul.f32 %v2476_v51, %v2476_v51 }
 0x1d0   :  { %v727_v34 = vmul.f32 %v3128_v35, %v703_v11  ;;  %v728_v58 = vmul.f32 %v3128_v35, %v704_v26  ;;  %v867_v17 = vpop.permute.xlu1 %866  ;;  %v2496_v4 = vadd.f32 %v2434_v46, %v1037_v36  ;;  %v939_v55 = vadd.f32 %v927_v40, %v838_v52  ;;  %v966_v40 = vpop.permute.xlu0 %965 }
 0x1d1   :  { %v872_v7 = vsel %vm870_vm9, %v2235_v38, %v867_v17  ;;  %v881_v43 = vsel %vm870_vm9, %v867_v17, %v3130_v3  ;;  %v800_v10 = vmul.f32 %v3136_v25, %v770_v1  ;;  %v1041_v62 = vadd.f32 %v1029_v14, %v940_v27  ;;  %v3147_v17 = vld [vmem:[#allocation29_spill] sm:$0xff] }
 0x1d2   :  { %v739_v0 = vadd.f32 %v727_v34, %v638_v30  ;;  %v740_v35 = vadd.f32 %v728_v58, %v639_v20  ;;  %v905_v61 = vmul.f32 %v2310_v2, %v872_v7  ;;  %v906_v38 = vmul.f32 %v2314_v5, %v881_v43  ;;  %v3148_v7 = vld [vmem:[#allocation22_spill] sm:$0xff]  ;;  %v3149_v43 = vld [vmem:[#allocation21_spill] sm:$0xff] }
 0x1d3   :  { %v1081_v3 = vmul.f32 %v2496_v4, %v2496_v4  ;;  %v1040_v22 = vadd.f32 %v1028_v23, %v939_v55  ;;  %v801_v45 = vmul.f32 %v3141_v53, %v779_v44  ;;  %v981_v27 = vsel %vm971_vm7, %v966_v40, %v3147_v17 }
 0x1d4   :  { %v840_v56 = vadd.f32 %v828_v8, %v739_v0  ;;  %v841_v59 = vadd.f32 %v829_v54, %v740_v35  ;;  %v968_v39 = vpop.permute.xlu1 %967  ;;  %v929_v32 = vmul.f32 %v3138_v37, %v905_v61  ;;  %v930_v23 = vmul.f32 %v3138_v37, %v906_v38  ;;  %v3146_v54 = vld [vmem:[#allocation16_spill] sm:$0xff]  ;;  %v3150_v61 = vld [vmem:[#allocation14_spill] sm:$0xff] }
 0x1d5   :  { %v973_v8 = vsel %vm971_vm7, %v2305_v6, %v968_v39  ;;  %v982_v52 = vsel %vm971_vm7, %v968_v39, %v2286_v31  ;;  %v1082_v26 = vadd.f32 %v1081_v3, %v1080_v57  ;;  %v2529_v14 = vadd.f32 %v3146_v54, %v1040_v22 }
 0x1d6   :  { %v1006_v36 = vmul.f32 %v2511_v41, %v973_v8  ;;  %v1007_v11 = vmul.f32 %v2516_v50, %v982_v52  ;;  %v972_v37 = vsel %vm971_vm7, %v2450_v33, %v966_v40  ;;  %v941_v1 = vadd.f32 %v929_v32, %v840_v56  ;;  %v3151_v40 = vld [vmem:[#allocation13_spill] sm:$0xff]  ;;  %v3153_v8 = vld [vmem:[#allocation19_spill] sm:$0xff] }
 0x1d7   :  { %v2536_v6 = vadd.f32 %v3146_v54, %v1041_v62  ;;  %v942_v30 = vadd.f32 %v930_v23, %v841_v59  ;;  %1083 = vadd.xlane.f32.xlu0 %v1082_v26  ;;  %v1089_v58 = vmul.f32 %v2529_v14, %v2529_v14  ;;  %v634_v57 = vadd.f32 %v2319_v63, %v2316_v9  ;;  %v3152_v63 = vld [vmem:[#allocation20_spill] sm:$0xff] }
 0x1d8   :  { %v1030_v31 = vmul.f32 %v3140_v18, %v1006_v36  ;;  %v1031_v20 = vmul.f32 %v3140_v18, %v1007_v11  ;;  %v663_v34 = vpop.permute.xlu1 %662  ;;  %v824_v38 = vmul.f32 %v3150_v61, %v800_v10  ;;  %v825_v3 = vmul.f32 %v3150_v61, %v801_v45  ;;  %v3154_v11 = vld [vmem:[#allocation34_spill] sm:$0xff]  ;;  %v142_v61 = vpop.f32.mrb[4].mxu0 }
 0x1d9   :  { %v669_v33 = vsel %vm668_vm6, %v3148_v7, %v663_v34  ;;  %v678_v55 = vsel %vm668_vm6, %v663_v34, %v3149_v43  ;;  %v1090_v18 = vmul.f32 %v2536_v6, %v2536_v6  ;;  %v1002_v23 = vmul.f32 %v2511_v41, %v972_v37 }
 0x1da   :  { %v1042_v49 = vadd.f32 %v1030_v31, %v941_v1  ;;  %v1043_v44 = vadd.f32 %v1031_v20, %v942_v30  ;;  %v699_v0 = vmul.f32 %v3142_v19, %v669_v33  ;;  %v700_v35 = vmul.f32 %v3143_v24, %v678_v55 }
 0x1db   :  { %v1091_v22 = vadd.f32 %v1090_v18, %v1089_v58  ;;  %v1003_v9 = vmul.f32 %v2516_v50, %v981_v27  ;;  %v1026_v17 = vmul.f32 %v3114_v15, %v1002_v23 }
 0x1dc   :  { %v723_v56 = vmul.f32 %v3151_v40, %v699_v0  ;;  %v724_v59 = vmul.f32 %v3151_v40, %v700_v35  ;;  %v865_v39 = vpop.permute.xlu1 %864  ;;  %v2562_v62 = vadd.f32 %v3146_v54, %v1042_v49  ;;  %v2565_v32 = vadd.f32 %v3146_v54, %v1043_v44  ;;  %v44_v35 = vld [vmem:[%s2973_s2 + $0x10] sm:$0xff] }
 0x1dd   :  { %1092 = vadd.xlane.f32.xlu1 %v1091_v22  ;;  %v871_v10 = vsel %vm870_vm9, %v3152_v63, %v865_v39  ;;  %v880_v52 = vsel %vm870_vm9, %v865_v39, %v3153_v8  ;;  %v1027_v27 = vmul.f32 %v3114_v15, %v1003_v9  ;;  %v1078_v15 = vld [vmem:[%s2979_s8] sm:$0xff]  ;;  %v3156_v22 = vmov 1   ;;  %v193_v39 = vpop.f32.mrb[4].mxu1 }
 0x1de   :  { %v735_v36 = vadd.f32 %v723_v56, %v634_v57  ;;  %v736_v26 = vadd.f32 %v724_v59, %v3154_v11  ;;  %v901_v45 = vmul.f32 %v2310_v2, %v871_v10  ;;  %v902_v54 = vmul.f32 %v2314_v5, %v880_v52  ;;  %v195_v23 = vpop.f32.mrb[5].mxu1 }
 0x1df   :  { %v1224_v37 = vmul.f32 %v2562_v62, %v2562_v62  ;;  %v1225_v1 = vmul.f32 %v2565_v32, %v2565_v32  ;;  %v3155_v57 = vmov 4   ;;  %v3157_v56 = vmov 2   ;;  %v197_v9 = vpop.f32.mrb[6].mxu1 }
 0x1e0   :  { %v836_v30 = vadd.f32 %v824_v38, %v735_v36  ;;  %v837_v31 = vadd.f32 %v825_v3, %v736_v26  ;;  %v925_v20 = vmul.f32 %v1723_v29, %v901_v45  ;;  %v926_v34 = vmul.f32 %v1723_v29, %v902_v54  ;;  %v144_v38 = vpop.f32.mrb[5].mxu0  ;;  %v198_v63 = vpop.f32.mrb[7].mxu1 }
 0x1e1   :  { %v1226_v58 = vadd.f32 %v1225_v1, %v1224_v37  ;;  %v146_v3 = vpop.f32.mrb[6].mxu0  ;;  %v3158_v59 = vmov 0  }
 0x1e2   :  { %v937_v7 = vadd.f32 %v925_v20, %v836_v30  ;;  %v938_v33 = vadd.f32 %v926_v34, %v837_v31  ;;  %v147_v40 = vpop.f32.mrb[7].mxu0 }
 0x1e3   :  { %1227 = vadd.xlane.f32.xlu0 %v1226_v58 }
 0x1e4   :  { %v1038_v43 = vadd.f32 %v1026_v17, %v937_v7  ;;  %v1039_v55 = vadd.f32 %v1027_v27, %v938_v33 }
 0x1e6   :  { %v2587_v18 = vadd.f32 %v2434_v46, %v1038_v43  ;;  %v2590_v49 = vadd.f32 %v2434_v46, %v1039_v55  ;;  %v2605_v46 = vld [vmem:[%s2974_s3 + $0x10] sm:$0xff] }
 0x1e8   :  { %v1215_v44 = vmul.f32 %v2587_v18, %v2587_v18  ;;  %v1216_v29 = vmul.f32 %v2590_v49, %v2590_v49 }
 0x1ea   :  { %v1217_v0 = vadd.f32 %v1216_v29, %v1215_v44 }
 0x1ec   :  { %1218 = vadd.xlane.f32.xlu1 %v1217_v0 }
 0x1f9   :  { %1144 = vperm.xlu0 %1525, %v1078_v15  }
 0x1fd   :  { %57 = vperm.xlu1 %1527, %v44_v35   ;;  %1528 = vset.pattern.permute.xlu0 %v3155_v57 }
 0x1fe   :  { %223 = vperm.xlu0 %1528, %v2605_v46  }
 0x201   :  { %314 = vperm.xlu1 %1527, %v2605_v46  }
 0x202   :  { %1529 = vset.pattern.permute.xlu0 %v3156_v22 }
 0x203   :  { %415 = vperm.xlu0 %1529, %v2605_v46  }
 0x205   :  { %1530 = vset.pattern.permute.xlu1 %v3157_v56 }
 0x207   :  { %1537 = vset.pattern.permute.xlu0 %v3158_v59 }
 0x264   :  { %v1084_v10 = vpop.xlane.xlu0 %1083 }
 0x265   :  { %v1085_v8 = vmax.f32 %v1084_v10, 1e-24 }
 0x267   :  { %1544 = vrsqrt.f32 %v1085_v8 }
 0x26a   :  { %v1093_v52 = vpop.xlane.xlu1 %1092 }
 0x26b   :  { %v1094_v36 = vmax.f32 %v1093_v52, 1e-24 }
 0x26d   :  { %1546 = vrsqrt.f32 %v1094_v36 }
 0x270   :  { %v1228_v11 = vpop.xlane.xlu0 %1227 }
 0x271   :  { %v1229_v26 = vmax.f32 %v1228_v11, 1e-24  ;;  %v1545_v45 = vpop.eup %1544 }
 0x272   :  { %v1088_v54 = vmul.f32 %v1545_v45, %v2496_v4  ;;  %v1087_v33 = vmul.f32 %v1545_v45, %v2476_v51  ;;  %v3163_v45 = vld [vmem:[#allocation24_spill] sm:$0xff] }
 0x273   :  { %1548 = vrsqrt.f32 %v1229_v26 }
 0x274   :  { %v1099_v37 = vpack.c.bf16 %v1088_v54, %v1088_v54  ;;  %v1098_v0 = vpack.c.bf16 %v1087_v33, %v1087_v33 }
 0x276   :  { %1134 = vmatprep.mubr.bf16.mxu0 %v1099_v37 }
 0x277   :  { %v1547_v1 = vpop.eup %1546 }
 0x278   :  { %v1097_v30 = vmul.f32 %v1547_v1, %v2536_v6  ;;  %v1096_v31 = vmul.f32 %v1547_v1, %v2529_v14  ;;  %v1145_v22 = vpop.permute.xlu0 %1144 }
 0x279   :  { %v1219_v20 = vpop.xlane.xlu1 %1218 }
 0x27a   :  { %v1101_v34 = vpack.c.bf16 %v1097_v30, %v1097_v30  ;;  %v1220_v58 = vmax.f32 %v1219_v20, 1e-24  ;;  %v1100_v17 = vpack.c.bf16 %v1096_v31, %v1096_v31 }
 0x27c   :  { %1102 = vmatprep.subr.bf16.mxu0 %v1101_v34  ;;  %1550 = vrsqrt.f32 %v1220_v58 }
 0x27d   :  { %v1549_v27 = vpop.eup %1548  ;;  %1103 = vmatpush1.bf16.xpose.msra.mxu0 %v1100_v17  ;;  %v58_v7 = vpop.permute.xlu1 %57 }
 0x27e   :  { %v2618_v43 = vadd.f32 %v142_v61, %v58_v7  ;;  %v1232_v4 = vmul.f32 %v1549_v27, %v2565_v32  ;;  %v1231_v55 = vmul.f32 %v1549_v27, %v2562_v62  ;;  %v2622_v6 = vadd.f32 %v195_v23, %v58_v7  ;;  %v2671_v40 = vpop.permute.xlu0 %223 }
 0x27f   :  { %v2626_v14 = vadd.f32 %v144_v38, %v58_v7  ;;  %v2632_v51 = vadd.f32 %v193_v39, %v58_v7  ;;  %v3159_v61 = vmov 3   ;;  %v3162_v38 = vmov 7  }
 0x280   :  { %242 = vrot.lane.b32.xlu1 %v2618_v43, %s1595_s29  ;;  %v1236_v44 = vpack.c.bf16 %v1232_v4, %v1232_v4  ;;  %v1235_v29 = vpack.c.bf16 %v1231_v55, %v1231_v55  ;;  %260 = vrot.lane.b32.xlu0 %v2622_v6, %s1595_s29  ;;  %v234_v30 = vmul.f32 %v2671_v40, %v2618_v43 }
 0x281   :  { %v2669_v3 = vpop.permute.xlu1 %314  ;;  %v235_v11 = vmul.f32 %v2671_v40, %v2626_v14 }
 0x282   :  { %1237 = vmatprep.subr.bf16.mxu0 %v1236_v44  ;;  %v2673_v39 = vpop.permute.xlu0 %415 }
 0x284   :  { %1135 = vmatmul.mubr.bf16.vlgmr.msra.gmra.mrb[8].mxu0 %v1098_v0  ;;  %248 = vrot.lane.b32.xlu1 %v2626_v14, %s1595_s29 }
 0x285   :  { %1238 = vmatpush1.bf16.xpose.msra.mxu0 %v1235_v29  ;;  %547 = vrot.lane.b32.xlu0 %v2618_v43, %s1594_s28 }
 0x286   :  { %v1551_v62 = vpop.eup %1550 }
 0x287   :  { %v1223_v32 = vmul.f32 %v1551_v62, %v2590_v49  ;;  %v1222_v15 = vmul.f32 %v1551_v62, %v2587_v18  ;;  %v3160_v18 = vmov 5   ;;  %v3161_v49 = vmov 6  }
 0x288   :  { %516 = vperm.xlu1 %1530, %v2605_v46  }
 0x289   :  { %v1234_v35 = vpack.c.bf16 %v1223_v32, %v1223_v32  ;;  %v1233_v57 = vpack.c.bf16 %v1222_v15, %v1222_v15  ;;  %660 = vrot.lane.b32.xlu0 %v2632_v51, %s1600_s14 }
 0x28b   :  { %1269 = vmatprep.mubr.bf16.mxu0 %v1234_v35 }
 0x28c   :  { %345 = vrot.lane.b32.xlu1 %v2618_v43, %s1597_s11  ;;  %1270 = vmatmul.mubr.bf16.vlgmr.msra.gmra.mrb[12].mxu0 %v1233_v57 }
 0x28d   :  { %1531 = vset.pattern.permute.xlu1 %v3159_v61  ;;  %856 = vrot.lane.b32.xlu0 %v2626_v14, %s1599_s13 }
 0x28e   :  { %1399 = vmatprep.mubr.bf16.mxu0 %v3158_v59 }
 0x290   :  { %351 = vrot.lane.b32.xlu1 %v2626_v14, %s1597_s11 }
 0x291   :  { %666 = vrot.lane.b32.xlu0 %v2622_v6, %s1600_s14 }
 0x294   :  { %363 = vrot.lane.b32.xlu1 %v2622_v6, %s1597_s11 }
 0x298   :  { %617 = vperm.xlu1 %1531, %v2605_v46  }
 0x29c   :  { %446 = vrot.lane.b32.xlu1 %v2618_v43, %s1598_s12 }
 0x29d   :  { %1532 = vset.pattern.permute.xlu1 %v3160_v18 }
 0x2a0   :  { %452 = vrot.lane.b32.xlu1 %v2626_v14, %s1598_s12 }
 0x2a4   :  { %464 = vrot.lane.b32.xlu1 %v2622_v6, %s1598_s12 }
 0x2a8   :  { %718 = vperm.xlu1 %1532, %v2605_v46  }
 0x2ac   :  { %553 = vrot.lane.b32.xlu1 %v2626_v14, %s1594_s28 }
 0x2ad   :  { %1533 = vset.pattern.permute.xlu1 %v3161_v49 }
 0x2b0   :  { %565 = vrot.lane.b32.xlu1 %v2622_v6, %s1594_s28 }
 0x2b4   :  { %819 = vperm.xlu1 %1533, %v2605_v46  }
 0x2b8   :  { %1534 = vset.pattern.permute.xlu1 %v3162_v38 }
 0x2f2   :  { %v243_v56 = vpop.permute.xlu1 %242  ;;  %v2682_v10 = vpop.permute.xlu0 %260 }
 0x2f3   :  { %v276_v36 = vsel %vm264_vm2, %v2682_v10, %v243_v56 }
 0x2f4   :  { %v301_v54 = vmul.f32 %v3163_v45, %v276_v36 }
 0x2f6   :  { %v2675_v23 = vpop.permute.xlu1 %248  ;;  %v325_v20 = vmul.f32 %v2669_v3, %v301_v54 }
 0x2f7   :  { %v273_v63 = vsel %vm264_vm2, %v243_v56, %v2675_v23 }
 0x2f8   :  { %v302_v8 = vmul.f32 %v3121_v16, %v273_v63  ;;  %v337_v33 = vadd.f32 %v325_v20, %v234_v30  ;;  %v3164_v30 = vmov 8  }
 0x2fa   :  { %v326_v26 = vmul.f32 %v2669_v3, %v302_v8 }
 0x2fc   :  { %v338_v31 = vadd.f32 %v326_v26, %v235_v11 }
 0x307   :  { %v2677_v9 = vpop.permute.xlu1 %516 }
 0x30b   :  { %v346_v52 = vpop.permute.xlu1 %345 }
 0x30f   :  { %v2692_v37 = vpop.permute.xlu1 %351 }
 0x310   :  { %v374_v1 = vsel %vm365_vm3, %v346_v52, %v2692_v37 }
 0x311   :  { %v403_v16 = vmul.f32 %v3125_v60, %v374_v1 }
 0x313   :  { %v427_v34 = vmul.f32 %v2673_v39, %v403_v16  ;;  %v2702_v58 = vpop.permute.xlu1 %363 }
 0x314   :  { %v377_v17 = vsel %vm365_vm3, %v2702_v58, %v346_v52 }
 0x315   :  { %v439_v27 = vadd.f32 %v427_v34, %v338_v31  ;;  %v402_v7 = vmul.f32 %v3111_v28, %v377_v17  ;;  %v1050_v31 = vld [vmem:[%s2975_s4 + $0x10] sm:$0xff] }
 0x317   :  { %v426_v60 = vmul.f32 %v2673_v39, %v402_v7  ;;  %v2709_v4 = vpop.permute.xlu1 %617 }
 0x319   :  { %v438_v55 = vadd.f32 %v426_v60, %v337_v33 }
 0x31b   :  { %v447_v44 = vpop.permute.xlu1 %446 }
 0x31f   :  { %v2711_v29 = vpop.permute.xlu1 %452 }
 0x320   :  { %v475_v0 = vsel %vm466_vm4, %v447_v44, %v2711_v29 }
 0x321   :  { %v504_v62 = vmul.f32 %v3117_v48, %v475_v0  ;;  %v1079_v48 = vld [vmem:[%s2980_s9] sm:$0xff]  ;;  %v236_v0 = vmul.f32 %v2671_v40, %v2632_v51 }
 0x323   :  { %v528_v32 = vmul.f32 %v2677_v9, %v504_v62  ;;  %v2718_v15 = vpop.permute.xlu1 %464  ;;  %v237_v62 = vmul.f32 %v2671_v40, %v2622_v6 }
 0x324   :  { %v478_v28 = vsel %vm466_vm4, %v2718_v15, %v447_v44 }
 0x325   :  { %v2723_v35 = vadd.f32 %v528_v32, %v439_v27  ;;  %v503_v57 = vmul.f32 %v3131_v12, %v478_v28 }
 0x327   :  { %v527_v61 = vmul.f32 %v2677_v9, %v503_v57 }
 0x329   :  { %v2727_v18 = vadd.f32 %v527_v61, %v438_v55  ;;  %v3165_v55 = vld [vmem:[#allocation23_spill] sm:$0xff] }
 0x357   :  { %v1136_v49 = vpop.f32.mrb[8].mxu0 }
 0x358   :  { %v1147_v38 = vmul.f32 %v1145_v22, %v1136_v49  ;;  %v1138_v56 = vpop.f32.mrb[9].mxu0 }
 0x359   :  { %v1139_v63 = vpop.f32.mrb[10].mxu0 }
 0x35a   :  { %v1148_v8 = vadd.f32 %v1147_v38, %v1079_v48  ;;  %v1140_v52 = vpop.f32.mrb[11].mxu0 }
 0x35c   :  { %v1149_v36 = vsel %vm78_vm1, %v1148_v8, -inf }
 0x35d   :  { %1150 = vmax.xlane.f32.xlu1 %v1149_v36  ;;  %v3166_v36 = vld [vmem:[#allocation48_spill] sm:$0xff] }
 0x35f   :  { %v1271_v11 = vpop.f32.mrb[12].mxu0 }
 0x360   :  { %v1273_v26 = vpop.f32.mrb[13].mxu0  ;;  %v1277_v54 = vmul.f32 %v1271_v11, %v1145_v22  ;;  %v2762_v22 = vpop.permute.xlu1 %718 }
 0x361   :  { %v1274_v12 = vpop.f32.mrb[14].mxu0  ;;  %v3167_v26 = vld [vmem:[#allocation26_spill] sm:$0xff] }
 0x362   :  { %v1275_v45 = vpop.f32.mrb[15].mxu0  ;;  %v1278_v1 = vadd.f32 %v1277_v54, %v1079_v48 }
 0x364   :  { %v1279_v16 = vsel %vm78_vm1, %v1278_v1, -inf }
 0x36e   :  { %254 = vrot.lane.b32.xlu1 %v2632_v51, %s1595_s29 }
 0x392   :  { %1280 = vmax.xlane.f32.xlu1 %v1279_v16 }
 0x3a3   :  { %648 = vrot.lane.b32.xlu1 %v2618_v43, %s1600_s14 }
 0x3a7   :  { %654 = vrot.lane.b32.xlu1 %v2626_v14, %s1600_s14 }
 0x3ab   :  { %920 = vperm.xlu1 %1534, %v2605_v46  }
 0x3af   :  { %357 = vrot.lane.b32.xlu1 %v2632_v51, %s1597_s11 }
 0x3b0   :  { %1535 = vset.pattern.permute.xlu1 %v3164_v30 }
 0x3b3   :  { %749 = vrot.lane.b32.xlu1 %v2618_v43, %s1596_s30 }
 0x3b7   :  { %755 = vrot.lane.b32.xlu1 %v2626_v14, %s1596_s30 }
 0x3bb   :  { %761 = vrot.lane.b32.xlu1 %v2632_v51, %s1596_s30 }
 0x3bf   :  { %1021 = vperm.xlu1 %1535, %v2605_v46   ;;  %v2768_v46 = vpop.permute.xlu1 %553 }
 0x3c3   :  { %458 = vrot.lane.b32.xlu1 %v2632_v51, %s1598_s12  ;;  %v2773_v20 = vpop.permute.xlu1 %565 }
 0x3c4   :  { %1536 = vset.pattern.permute.xlu1 %v3158_v59 }
 0x3c7   :  { %850 = vrot.lane.b32.xlu1 %v2618_v43, %s1599_s13 }
 0x3cb   :  { %862 = vrot.lane.b32.xlu1 %v2632_v51, %s1599_s13 }
 0x3cf   :  { %559 = vrot.lane.b32.xlu1 %v2632_v51, %s1594_s28 }
 0x3d3   :  { %951 = vrot.lane.b32.xlu1 %v2618_v43, %s1601_s15  ;;  %v2777_v43 = vpop.permute.xlu1 %819 }
 0x3d7   :  { %957 = vrot.lane.b32.xlu1 %v2626_v14, %s1601_s15 }
 0x3db   :  { %963 = vrot.lane.b32.xlu1 %v2632_v51, %s1601_s15 }
 0x3df   :  { %1063 = vperm.xlu1 %1536, %v1050_v31  }
 0x3e3   :  { %767 = vrot.lane.b32.xlu1 %v2622_v6, %s1596_s30 }
 0x3e7   :  { %969 = vrot.lane.b32.xlu1 %v2622_v6, %s1601_s15 }
 0x3ea   :  { %v1151_v14 = vpop.xlane.xlu1 %1150 }
 0x3eb   :  { %v1152_v34 = vsub.f32 %v1148_v8, %v1151_v14 }
 0x3ed   :  { %v1153_v17 = vmul.f32 1.442695, %v1152_v34 }
 0x3ee   :  { %v255_v27 = vpop.permute.xlu1 %254 }
 0x3ef   :  { %1552 = vpow2.f32 %v1153_v17  ;;  %v267_v7 = vsel %vm264_vm2, %v255_v27, %v2682_v10  ;;  %v270_v33 = vsel %vm264_vm2, %v2675_v23, %v255_v27 }
 0x3f0   :  { %v303_v60 = vmul.f32 %v2158_v47, %v270_v33  ;;  %v304_v44 = vmul.f32 %v3165_v55, %v267_v7  ;;  %v3168_v7 = vld [vmem:[#allocation49_spill] sm:$0xff] }
 0x3f2   :  { %v327_v32 = vmul.f32 %v2669_v3, %v303_v60  ;;  %v328_v28 = vmul.f32 %v2669_v3, %v304_v44 }
 0x3f4   :  { %v339_v57 = vadd.f32 %v327_v32, %v236_v0  ;;  %v340_v10 = vadd.f32 %v328_v28, %v237_v62  ;;  %v3169_v28 = vld [vmem:[#allocation30_spill] sm:$0xff] }
 0x3f9   :  { %v2795_v61 = vpop.eup %1552 }
 0x3fa   :  { %v1155_v23 = vsel %vm78_vm1, %v2795_v61, 0.0 }
 0x3fb   :  { %1156 = vadd.xlane.f32.xlu0 %v1155_v23 }
 0x41f   :  { %v1281_v47 = vpop.xlane.xlu1 %1280 }
 0x420   :  { %v1282_v48 = vsub.f32 %v1278_v1, %v1281_v47 }
 0x422   :  { %v1283_v49 = vmul.f32 1.442695, %v1282_v48  ;;  %v3170_v48 = vld [vmem:[#allocation37_spill] sm:$0xff] }
 0x423   :  { %v649_v38 = vpop.permute.xlu1 %648 }
 0x424   :  { %1554 = vpow2.f32 %v1283_v49 }
 0x427   :  { %v655_v51 = vpop.permute.xlu1 %654 }
 0x42b   :  { %v2799_v56 = vpop.permute.xlu1 %920 }
 0x42e   :  { %v2801_v40 = vpop.eup %1554 }
 0x42f   :  { %v358_v63 = vpop.permute.xlu1 %357  ;;  %v1285_v3 = vsel %vm78_vm1, %v2801_v40, 0.0 }
 0x430   :  { %v368_v8 = vsel %vm365_vm3, %v358_v63, %v2702_v58  ;;  %v371_v52 = vsel %vm365_vm3, %v2692_v37, %v358_v63  ;;  %1286 = vadd.xlane.f32.xlu0 %v1285_v3  ;;  %v548_v58 = vpop.permute.xlu0 %547 }
 0x431   :  { %v404_v11 = vmul.f32 %v3166_v36, %v371_v52  ;;  %v405_v12 = vmul.f32 %v3167_v26, %v368_v8  ;;  %v3171_v8 = vld [vmem:[#allocation46_spill] sm:$0xff] }
 0x433   :  { %v428_v45 = vmul.f32 %v2673_v39, %v404_v11  ;;  %v429_v54 = vmul.f32 %v2673_v39, %v405_v12  ;;  %v2815_v1 = vpop.permute.xlu1 %749 }
 0x434   :  { %v2821_v37 = vpop.permute.xlu0 %660 }
 0x435   :  { %v440_v16 = vadd.f32 %v428_v45, %v339_v57  ;;  %v441_v30 = vadd.f32 %v429_v54, %v340_v10  ;;  %v674_v3 = vsel %vm668_vm6, %v655_v51, %v2821_v37  ;;  %v3172_v45 = vld [vmem:[#allocation51_spill] sm:$0xff] }
 0x437   :  { %v756_v31 = vpop.permute.xlu1 %755 }
 0x438   :  { %v857_v55 = vpop.permute.xlu0 %856  ;;  %v778_v47 = vsel %vm769_vm8, %v2815_v1, %v756_v31 }
 0x439   :  { %v806_v54 = vmul.f32 %v3172_v45, %v778_v47 }
 0x43b   :  { %v2817_v14 = vpop.permute.xlu1 %761 }
 0x43f   :  { %v2819_v34 = vpop.permute.xlu1 %1021 }
 0x443   :  { %v459_v17 = vpop.permute.xlu1 %458 }
 0x444   :  { %v469_v27 = vsel %vm466_vm4, %v459_v17, %v2718_v15  ;;  %v472_v39 = vsel %vm466_vm4, %v2711_v29, %v459_v17  ;;  %v579_v15 = vsel %vm567_vm5, %v2773_v20, %v548_v58  ;;  %v3175_v17 = vld [vmem:[#allocation47_spill] sm:$0xff] }
 0x445   :  { %v505_v33 = vmul.f32 %v3168_v7, %v472_v39  ;;  %v506_v60 = vmul.f32 %v3134_v21, %v469_v27  ;;  %v604_v57 = vmul.f32 %v3169_v28, %v579_v15  ;;  %v576_v21 = vsel %vm567_vm5, %v548_v58, %v2768_v46  ;;  %v3176_v7 = vld [vmem:[#allocation54_spill] sm:$0xff] }
 0x446   :  { %868 = vrot.lane.b32.xlu0 %v2622_v6, %s1599_s13  ;;  %v667_v6 = vpop.permute.xlu0 %666  ;;  %v605_v49 = vmul.f32 %v3170_v48, %v576_v21  ;;  %v775_v27 = vsel %vm769_vm8, %v756_v31, %v2817_v14  ;;  %v830_v31 = vmul.f32 %v2777_v43, %v806_v54 }
 0x447   :  { %v529_v44 = vmul.f32 %v2677_v9, %v505_v33  ;;  %v530_v0 = vmul.f32 %v2677_v9, %v506_v60  ;;  %v2835_v62 = vpop.permute.xlu1 %850  ;;  %v677_v9 = vsel %vm668_vm6, %v649_v38, %v655_v51  ;;  %v680_v23 = vsel %vm668_vm6, %v667_v6, %v649_v38  ;;  %v3173_v51 = vld [vmem:[#allocation50_spill] sm:$0xff] }
 0x448   :  { %v628_v63 = vmul.f32 %v2709_v4, %v604_v57  ;;  %v705_v52 = vmul.f32 %v3171_v8, %v677_v9  ;;  %v708_v11 = vmul.f32 %v3143_v24, %v680_v23  ;;  %v879_v38 = vsel %vm870_vm9, %v2835_v62, %v857_v55  ;;  %v3177_v57 = vld [vmem:[#allocation53_spill] sm:$0xff] }
 0x449   :  { %v541_v32 = vadd.f32 %v529_v44, %v440_v16  ;;  %v542_v29 = vadd.f32 %v530_v0, %v441_v30  ;;  %v3174_v30 = vld [vmem:[#allocation31_spill] sm:$0xff]  ;;  %v706_v24 = vmul.f32 %v3175_v17, %v674_v3  ;;  %v629_v44 = vmul.f32 %v2709_v4, %v605_v49 }
 0x44a   :  { %v729_v39 = vmul.f32 %v2762_v22, %v705_v52  ;;  %v640_v0 = vadd.f32 %v628_v63, %v2727_v18  ;;  %v732_v15 = vmul.f32 %v2762_v22, %v708_v11  ;;  %v807_v21 = vmul.f32 %v3177_v57, %v775_v27 }
 0x44b   :  { %v2841_v10 = vpop.permute.xlu1 %862  ;;  %v730_v47 = vmul.f32 %v2762_v22, %v706_v24 }
 0x44c   :  { %v876_v28 = vsel %vm870_vm9, %v857_v55, %v2841_v10  ;;  %v741_v48 = vadd.f32 %v729_v39, %v640_v0  ;;  %v641_v55 = vadd.f32 %v629_v44, %v2723_v35 }
 0x44e   :  { %v842_v52 = vadd.f32 %v830_v31, %v741_v48  ;;  %v742_v11 = vadd.f32 %v730_v47, %v641_v55 }
 0x44f   :  { %v560_v36 = vpop.permute.xlu1 %559 }
 0x450   :  { %v570_v26 = vsel %vm567_vm5, %v560_v36, %v2773_v20  ;;  %v573_v12 = vsel %vm567_vm5, %v2768_v46, %v560_v36  ;;  %v907_v20 = vmul.f32 %v3176_v7, %v879_v38  ;;  %v831_v36 = vmul.f32 %v2777_v43, %v807_v21 }
 0x451   :  { %v606_v16 = vmul.f32 %v3173_v51, %v573_v12  ;;  %v607_v58 = vmul.f32 %v3174_v30, %v570_v26  ;;  %v671_v30 = vsel %vm668_vm6, %v2821_v37, %v667_v6 }
 0x452   :  { %v931_v3 = vmul.f32 %v2799_v56, %v907_v20  ;;  %v843_v51 = vadd.f32 %v831_v36, %v742_v11  ;;  %v707_v39 = vmul.f32 %v3142_v19, %v671_v30 }
 0x453   :  { %v630_v33 = vmul.f32 %v2709_v4, %v606_v16  ;;  %v631_v46 = vmul.f32 %v2709_v4, %v607_v58  ;;  %v952_v60 = vpop.permute.xlu1 %951  ;;  %v3178_v4 = vld [vmem:[#allocation55_spill] sm:$0xff] }
 0x454   :  { %v908_v49 = vmul.f32 %v3178_v4, %v876_v28  ;;  %v943_v38 = vadd.f32 %v931_v3, %v842_v52  ;;  %v731_v37 = vmul.f32 %v2762_v22, %v707_v39 }
 0x455   :  { %v642_v9 = vadd.f32 %v630_v33, %v541_v32  ;;  %v643_v23 = vadd.f32 %v631_v46, %v542_v29  ;;  %v1560_v32 = vld [vmem:[%s2976_s5 + $0x20] ss:$0 sm:$0xff] }
 0x456   :  { %v932_v26 = vmul.f32 %v2799_v56, %v908_v49 }
 0x457   :  { %v958_v18 = vpop.permute.xlu1 %957  ;;  %v744_v63 = vadd.f32 %v732_v15, %v643_v23  ;;  %v743_v19 = vadd.f32 %v731_v37, %v642_v9 }
 0x458   :  { %v980_v8 = vsel %vm971_vm7, %v952_v60, %v958_v18  ;;  %v944_v58 = vadd.f32 %v932_v26, %v843_v51 }
 0x459   :  { %v1008_v29 = vmul.f32 %v1560_v32, %v980_v8 }
 0x45b   :  { %v1032_v12 = vmul.f32 %v2819_v34, %v1008_v29  ;;  %v964_v45 = vpop.permute.xlu1 %963 }
 0x45c   :  { %v977_v54 = vsel %vm971_vm7, %v958_v18, %v964_v45 }
 0x45d   :  { %v1044_v35 = vadd.f32 %v1032_v12, %v943_v38  ;;  %v1009_v16 = vmul.f32 %v2446_v42, %v977_v54 }
 0x45f   :  { %v1033_v17 = vmul.f32 %v2819_v34, %v1009_v16  ;;  %v1064_v24 = vpop.permute.xlu1 %1063 }
 0x460   :  { %v1074_v27 = vadd.f32 %v1064_v24, %v1044_v35 }
 0x461   :  { %v1045_v7 = vadd.f32 %v1033_v17, %v944_v58 }
 0x462   :  { %v1161_v46 = vpack.c.bf16 %v1074_v27, %v1074_v27 }
 0x463   :  { %v1075_v20 = vadd.f32 %v1064_v24, %v1045_v7  ;;  %v768_v33 = vpop.permute.xlu1 %767 }
 0x464   :  { %v772_v44 = vsel %vm769_vm8, %v2817_v14, %v768_v33  ;;  %v781_v42 = vsel %vm769_vm8, %v768_v33, %v2815_v1  ;;  %v1167_v14 = vsel %vm85_vm0, %v1161_v46, 0 }
 0x465   :  { %v1162_v6 = vpack.c.bf16 %v1075_v20, %v1075_v20  ;;  %v808_v0 = vmul.f32 %v3136_v25, %v772_v44  ;;  %v809_v15 = vmul.f32 %v3141_v53, %v781_v42 }
 0x467   :  { %v832_v28 = vmul.f32 %v2777_v43, %v808_v0  ;;  %v833_v31 = vmul.f32 %v2777_v43, %v809_v15  ;;  %v970_v57 = vpop.permute.xlu1 %969  ;;  %1483 = vmatprep.subr.msk.bf16.mxu1 %vm85_vm0, %v1162_v6 }
 0x468   :  { %v974_v1 = vsel %vm971_vm7, %v964_v45, %v970_v57  ;;  %v983_v22 = vsel %vm971_vm7, %v970_v57, %v952_v60  ;;  %1173 = vmatpush1.bf16.msra.mxu1 %v1167_v14 }
 0x469   :  { %v844_v25 = vadd.f32 %v832_v28, %v743_v19  ;;  %v845_v21 = vadd.f32 %v833_v31, %v744_v63  ;;  %v1010_v53 = vmul.f32 %v2511_v41, %v974_v1  ;;  %v1011_v9 = vmul.f32 %v2516_v50, %v983_v22 }
 0x46b   :  { %v1034_v43 = vmul.f32 %v2819_v34, %v1010_v53  ;;  %v1035_v23 = vmul.f32 %v2819_v34, %v1011_v9 }
 0x488   :  { %v1157_v47 = vpop.xlane.xlu0 %1156 }
 0x489   :  { %1556 = vrcp.f32 %v1157_v47 }
 0x493   :  { %v1557_v48 = vpop.eup %1556 }
 0x494   :  { %v1159_v3 = vmul.f32 %v1557_v48, %v2795_v61 }
 0x496   :  { %v1160_v4 = vpack.c.bf16 %v1159_v3, %v1159_v3 }
 0x498   :  { %1484 = vmatmul.mubr.msk.bf16.vlgmr.msra.gmra.mrb[8].mxu1 %vm78_vm1, %v1160_v4 }
 0x499   :  { %1334 = vmatprep.mubr.bf16.mxu1 %v3158_v59 }
 0x4bd   :  { %v1287_v60 = vpop.xlane.xlu0 %1286 }
 0x4be   :  { %1558 = vrcp.f32 %v1287_v60 }
 0x4c1   :  { %v869_v49 = vpop.permute.xlu0 %868 }
 0x4c2   :  { %v873_v41 = vsel %vm870_vm9, %v2841_v10, %v869_v49  ;;  %v882_v50 = vsel %vm870_vm9, %v869_v49, %v2835_v62 }
 0x4c3   :  { %v909_v34 = vmul.f32 %v2310_v2, %v873_v41  ;;  %v910_v61 = vmul.f32 %v2314_v5, %v882_v50 }
 0x4c5   :  { %v933_v18 = vmul.f32 %v2799_v56, %v909_v34  ;;  %v934_v63 = vmul.f32 %v2799_v56, %v910_v61  ;;  %v1346_v56 = vld [vmem:[%s2978_s7] sm:$0xff] }
 0x4c6   :  { %1349 = vperm.xlu0 %1537, %v1346_v56  }
 0x4c7   :  { %v945_v8 = vadd.f32 %v933_v18, %v844_v25  ;;  %v946_v55 = vadd.f32 %v934_v63, %v845_v21 }
 0x4c8   :  { %v1559_v32 = vpop.eup %1558 }
 0x4c9   :  { %v1047_v52 = vadd.f32 %v1035_v23, %v946_v55  ;;  %v1046_v36 = vadd.f32 %v1034_v43, %v945_v8  ;;  %v1289_v10 = vmul.f32 %v1559_v32, %v2801_v40 }
 0x4cb   :  { %v1077_v29 = vadd.f32 %v1064_v24, %v1047_v52  ;;  %v1076_v11 = vadd.f32 %v1064_v24, %v1046_v36  ;;  %v1290_v5 = vpack.c.bf16 %v1289_v10, %v1289_v10 }
 0x4cd   :  { %v1292_v38 = vpack.c.bf16 %v1077_v29, %v1077_v29  ;;  %v1291_v13 = vpack.c.bf16 %v1076_v11, %v1076_v11 }
 0x4cf   :  { %1485 = vmatprep.subr.msk.bf16.mxu1 %vm85_vm0, %v1292_v38  ;;  %v1297_v2 = vsel %vm85_vm0, %v1291_v13, 0 }
 0x4d0   :  { %1303 = vmatpush1.bf16.msra.mxu1 %v1297_v2 }
 0x4d3   :  { %1486 = vmatmul.mubr.msk.bf16.vlgmr.msra.gmra.mrb[12].mxu1 %vm78_vm1, %v1290_v5 }
 0x4d4   :  { %1440 = vmatprep.mubr.bf16.mxu1 %v3158_v59  ;;  %v1345_v59 = vld [vmem:[%s2977_s6] sm:$0xf]  ;;  %s1602_s6 = smov [#allocation2]  }
 0x4d5   :  { %s1459_s7 = sshll.u32 %s1602_s6, 4  ;;  %s1460_s7 = int_to_ptr.vmem [resolvable:$true] %s1459_s7 }
 0x4d6   :  { %s1561_s12 = scalar_lea.vmem %s1460_s7, 512  ;;  %p1566_p1 = scmp.lt.s32.totalorder %s1460_s7, %s1460_s7 }
 0x4d7   :  { %p1562_p0 = scmp.ne.s32.totalorder %s1460_s7, %s1561_s12  ;;  %p1567_p2 = scmp.lt.s32.totalorder %s1561_s12, %s1561_s12 }
 0x4d9   :  { %p1568_p3 = por %p1567_p2, %p1566_p1 }
 0x4db   :  { %p1569_p4 = pnand %p1568_p3, %p1562_p0 }
 0x545   :  { %v1350_v39 = vpop.permute.xlu0 %1349 }
 0x56b   :  { %v1206_v62 = vpop.f32.mrb[8].mxu1 }
 0x56c   :  { %v1213_v26 = vpack.c.bf16 %v1206_v62, %v1206_v62  ;;  %v1208_v40 = vpop.f32.mrb[9].mxu1 }
 0x56d   :  { %v1214_v12 = vpack.c.bf16 %v1208_v40, %v1208_v40  ;;  %v1210_v45 = vpop.f32.mrb[10].mxu1 }
 0x56e   :  { %v1356_v54 = vsel %vm85_vm0, %v1213_v26, 0  ;;  %v1211_v51 = vpop.f32.mrb[11].mxu1 }
 0x56f   :  { %1487 = vmatprep.subr.msk.bf16.mxu0 %vm85_vm0, %v1214_v12 }
 0x570   :  { %1368 = vmatpush1.bf16.msra.mxu0 %v1356_v54 }
 0x573   :  { %1488 = vmatmul.mubr.msk.bf16.vlgmr.msra.gmra.mrb[16].mxu0 %vm78_vm1, %v1345_v59 }
 0x5a6   :  { %v1336_v35 = vpop.f32.mrb[12].mxu1 }
 0x5a7   :  { %v1343_v16 = vpack.c.bf16 %v1336_v35, %v1336_v35  ;;  %v1338_v30 = vpop.f32.mrb[13].mxu1 }
 0x5a8   :  { %v1344_v58 = vpack.c.bf16 %v1338_v30, %v1338_v30  ;;  %v1340_v17 = vpop.f32.mrb[14].mxu1 }
 0x5a9   :  { %v1362_v24 = vsel %vm85_vm0, %v1343_v16, 0  ;;  %v1341_v27 = vpop.f32.mrb[15].mxu1 }
 0x5aa   :  { %1489 = vmatprep.subr.msk.bf16.mxu1 %vm85_vm0, %v1344_v58 }
 0x5ab   :  { %1409 = vmatpush1.bf16.msra.mxu1 %v1362_v24 }
 0x5ae   :  { %1490 = vmatmul.mubr.msk.bf16.vlgmr.msra.gmra.mrb[16].mxu1 %vm78_vm1, %v1345_v59 }
 0x646   :  { %v1401_v7 = vpop.f32.mrb[16].mxu0 }
 0x647   :  { %v1403_v20 = vpop.f32.mrb[17].mxu0  ;;  %v1402_v33 = vadd.f32 %v1401_v7, %v1350_v39 }
 0x648   :  { %v1405_v46 = vpop.f32.mrb[18].mxu0  ;;  %v1404_v44 = vadd.f32 %v1403_v20, %v1350_v39 }
 0x649   :  { %v1406_v42 = vpop.f32.mrb[19].mxu0  ;;  %1449 = vst [vmem:[#allocation2] sm:$0xff] %v1402_v33 }
 0x64a   :  { %1450 = vst [vmem:[#allocation2 + $0x8] sm:$0xff] %v1404_v44 }
 0x681   :  { %v1442_v37 = vpop.f32.mrb[16].mxu1 }
 0x682   :  { %v1444_v6 = vpop.f32.mrb[17].mxu1  ;;  %v1443_v0 = vadd.f32 %v1442_v37, %v1350_v39 }
 0x683   :  { %v1446_v15 = vpop.f32.mrb[18].mxu1  ;;  %v1445_v19 = vadd.f32 %v1444_v6, %v1350_v39 }
 0x684   :  { %v1447_v28 = vpop.f32.mrb[19].mxu1  ;;  %1451 = vst [vmem:[#allocation2 + $0x10] sm:$0xff] %v1443_v0 }
 0x685   :  { %1452 = vst [vmem:[#allocation2 + $0x18] sm:$0xff] %v1445_v19 }
 0x686   :  { %1572 = shalt.err (!%p1569_p4)
}
 0x687   :  { %s1573_s15 = scalar_lea.hbm %s2981_s10, 512 }
 0x688   :  { %p1574_p5 = scmp.ne.s32.totalorder %s2981_s10, %s1573_s15  ;;  %p1577_p6 = scmp.lt.u32.totalorder %s1573_s15, %s2981_s10 }
 0x68a   :  { %p1579_p7 = pnand %p1577_p6, %p1574_p5 }
 0x68c   :  { %1582 = shalt.err (!%p1579_p7)
}
 0x68d   :  { %1462 = dma.vmem_to_hbm [thread:$0]  %s1460_s7, 512, %s2981_s10, [#allocation3]  }
 0x68e   :  { %1583 = dma.done.wait [#allocation3], 512  }
 0x68f   :  { %1584 = vsyncadd [#allocation3], 4294966784 }
 0x690   :  { %1466 = vsyncpa [#allocation3], 1 }

</bundles_post_ra>
